<compile_context>
chip_gen: v7x
topology: tpu7x:2x2x1
jax: 0.10.0
libtpu: 0.0.40
codegen_flags: <defaults>
</compile_context>

<pallas_src>
import functools

import numpy as np

import jax
import jax.numpy as jnp
from jax.experimental import pallas as pl
from jax.experimental.pallas import tpu as pltpu


# ---------------------------------------------------------------------------
# Helpers (trace-time constants / parameter packing)
# ---------------------------------------------------------------------------
def _valid_mask(n, h, w):
    """1.0 on valid output pixels, 0.0 on pad-garbage columns, in the
    flattened 'top-left aligned' coordinates used inside the kernel."""
    hp, wp = h + 2, w + 2
    length = n * hp * wp - 2 * wp - 2
    m = np.zeros((1, length), np.float32)
    for b in range(n):
        for y in range(h):
            base = (b * hp + y) * wp
            m[0, base:base + w] = 1.0
    return jnp.asarray(m)


def make_params(key, cin=4, c1=8, c2=8):
    """Deterministic synthetic Conv2d weights (PyTorch layout, then packed)."""
    k1, k2, k3, k4 = jax.random.split(key, 4)
    # PyTorch Conv2d weight layout: (Cout, Cin, kh, kw)
    w1_t = 0.1 * jax.random.normal(k1, (c1, cin, 3, 3), jnp.float32)
    b1_t = 0.1 * jax.random.normal(k2, (c1,), jnp.float32)
    w2_t = 0.1 * jax.random.normal(k3, (c2, c1, 3, 3), jnp.float32)
    b2_t = 0.1 * jax.random.normal(k4, (c2,), jnp.float32)

    def pack(w_t):  # (Cout, Cin, 3, 3) -> (9, Cout, Cin), tap index = dy*3 + dx
        co, ci = w_t.shape[0], w_t.shape[1]
        return jnp.transpose(w_t, (2, 3, 0, 1)).reshape(9, co, ci)

    return {
        "w1": pack(w1_t), "b1": b1_t.reshape(-1, 1),
        "w2": pack(w2_t), "b2": b2_t.reshape(-1, 1),
        "_torch": (w1_t, b1_t, w2_t, b2_t),
    }


# ---------------------------------------------------------------------------
# Fused kernel: conv1 + ReLU + conv2 + softmax + entropy
# ---------------------------------------------------------------------------
def _fused_kernel(x_ref, mask_ref, w1_ref, b1_ref, w2_ref, b2_ref,
                  out_ref, ent_ref, h1pad_ref, p_scr_ref,
                  *, n, h, w, c1, c2):
    hp, wp = h + 2, w + 2
    s = n * hp * wp                    # stacked, padded, flattened spatial size
    l = s - 2 * wp - 2                 # flattened conv-output length
    mask = mask_ref[...]               # (1, L)

    def conv3x3(src_ref, w_ref, b_ref):
        # sum over 9 taps of (Cout, Cin) @ (Cin, L); each tap is a contiguous
        # lane slice of the padded+stacked buffer (in-kernel "im2col").
        acc = None
        for dy in range(3):
            for dx in range(3):
                tap = dy * 3 + dx
                off = dy * wp + dx
                xs = src_ref[:, off:off + l]                       # (Cin, L)
                t = jnp.dot(w_ref[tap], xs,
                            preferred_element_type=jnp.float32)    # (Cout, L)
                acc = t if acc is None else acc + t
        return acc + b_ref[...]                                    # + (Cout, 1)

    # child 0: Conv2d(Cin -> C1)  +  child 1: ReLU  (mask zeroes garbage cols)
    h1 = jnp.maximum(conv3x3(x_ref, w1_ref, b1_ref), 0.0) * mask   # (C1, L)

    # re-embed h1 into the zero-padded stacked layout (VMEM scratch only)
    h1pad_ref[...] = jnp.zeros((c1, s), jnp.float32)
    h1pad_ref[:, wp + 1:wp + 1 + l] = h1

    # child 2: Conv2d(C1 -> C2) == exit layer
    z = conv3x3(h1pad_ref, w2_ref, b2_ref)                         # (C2, L)

    # softmax over channels (sublane axis) + entropy over valid pixels only
    zmax = jnp.max(z, axis=0, keepdims=True)                       # (1, L)
    e = jnp.exp(z - zmax)
    denom = jnp.sum(e, axis=0, keepdims=True)                      # (1, L)
    p = e * pl.reciprocal(denom, approx=True)                      # (C2, L)
    logp = (z - zmax) - jnp.log(denom)                             # log-softmax
    ent_ref[0, 0] = -jnp.sum(p * logp * mask) * (1.0 / float(n * h * w))

    # gather valid columns into (N, C2, H*W); NCHW is then a free reshape
    p_scr_ref[...] = p
    for b in range(n):
        for y in range(h):
            src = (b * hp + y) * wp
            out_ref[b, :, y * w:(y + 1) * w] = p_scr_ref[:, src:src + w]


# ---------------------------------------------------------------------------
# EarlyExitResNet forward (public wrapper, NCHW in / NCHW out)
# ---------------------------------------------------------------------------
def early_exit_resnet_forward(x_nchw, params):
    n, cin, h, w = x_nchw.shape
    hp, wp = h + 2, w + 2
    s = n * hp * wp
    l = s - 2 * wp - 2
    c1 = params["w1"].shape[1]
    c2 = params["w2"].shape[1]

    # zero-pad each image, stack all images along rows, flatten the spatial
    # dims -> (channels on sublanes, flattened padded spatial on lanes).
    xpad = jnp.pad(x_nchw, ((0, 0), (0, 0), (1, 1), (1, 1)))       # (N,Cin,H+2,W+2)
    xflat = jnp.transpose(xpad, (1, 0, 2, 3)).reshape(cin, s)       # (Cin, S)

    mask = _valid_mask(n, h, w)                                     # (1, L) const

    flops = 2 * 9 * l * (cin * c1 + c1 * c2) + 12 * c2 * l
    transcendentals = (c2 + 2) * l
    bytes_accessed = 4 * (cin * s + l + 9 * (c1 * cin + c2 * c1) + c1 + c2
                          + n * c2 * h * w + 1)

    kern = functools.partial(_fused_kernel, n=n, h=h, w=w, c1=c1, c2=c2)
    p_flat, ent = pl.pallas_call(
        kern,
        out_shape=(
            jax.ShapeDtypeStruct((n, c2, h * w), jnp.float32),
            jax.ShapeDtypeStruct((1, 1), jnp.float32),
        ),
        in_specs=[pl.BlockSpec(memory_space=pltpu.MemorySpace.VMEM)] * 6,
        out_specs=(
            pl.BlockSpec(memory_space=pltpu.MemorySpace.VMEM),
            pl.BlockSpec(memory_space=pltpu.MemorySpace.SMEM),
        ),
        scratch_shapes=[
            pltpu.VMEM((c1, s), jnp.float32),   # re-padded conv1 activation
            pltpu.VMEM((c2, l), jnp.float32),   # softmax probs (for extraction)
        ],
        cost_estimate=pl.CostEstimate(flops=flops,
                                      transcendentals=transcendentals,
                                      bytes_accessed=bytes_accessed),
    )(xflat, mask, params["w1"], params["b1"], params["w2"], params["b2"])

    exit_output = p_flat.reshape(n, c2, h, w)   # (N, C, H*W) -> NCHW, free reshape
    return exit_output, ent[0, 0]


# ---------------------------------------------------------------------------
# Pure-JAX reference (XLA convs) for a correctness sanity check
# ---------------------------------------------------------------------------
def _reference_forward(x_nchw, params):
    w1_t, b1_t, w2_t, b2_t = params["_torch"]
    dn = jax.lax.conv_dimension_numbers(x_nchw.shape, w1_t.shape,
                                        ("NCHW", "OIHW", "NCHW"))
    y = jax.lax.conv_general_dilated(x_nchw, w1_t, (1, 1), ((1, 1), (1, 1)),
                                     dimension_numbers=dn)
    y = jnp.maximum(y + b1_t[None, :, None, None], 0.0)
    y = jax.lax.conv_general_dilated(y, w2_t, (1, 1), ((1, 1), (1, 1)),
                                     dimension_numbers=dn)
    y = y + b2_t[None, :, None, None]
    probs = jax.nn.softmax(y, axis=1)
    ent = -(probs * jnp.log(probs)).sum(axis=1).mean()
    return probs, ent


if __name__ == "__main__":
    key = jax.random.PRNGKey(0)
    kx, kp = jax.random.split(key)

    # small shapes consistent with the module: batch=2, channels=4, spatial=16
    x = jax.random.normal(kx, (2, 4, 16, 16), jnp.float32)
    params = make_params(kp)

    fwd = jax.jit(early_exit_resnet_forward)
    exit_output, entropy = fwd(x, params)
    exit_output = jax.block_until_ready(exit_output)
    entropy = jax.block_until_ready(entropy)

    # sanity check against a pure-JAX reference (tolerance covers the
    # approx-reciprocal used for the softmax normalization)
    p_expected, ent_expected = _reference_forward(x, params)
    assert exit_output.shape == (2, 8, 16, 16)
    assert jnp.allclose(exit_output, p_expected, atol=3e-3, rtol=3e-3), (
        float(jnp.max(jnp.abs(exit_output - p_expected))))
    assert jnp.allclose(entropy, ent_expected, atol=3e-3, rtol=3e-3), (
        float(entropy), float(ent_expected))

    print("KERNEL_OK")
</pallas_src>

<mosaic_0001>
module attributes {stable_mosaic.version = 11 : i64} {
  func.func @_fused_kernel(%arg0: memref<4x648xf32, #tpu.memory_space<vmem>>, %arg1: memref<1x610xf32, #tpu.memory_space<vmem>>, %arg2: memref<9x8x4xf32, #tpu.memory_space<vmem>>, %arg3: memref<8x1xf32, #tpu.memory_space<vmem>>, %arg4: memref<9x8x8xf32, #tpu.memory_space<vmem>>, %arg5: memref<8x1xf32, #tpu.memory_space<vmem>>, %arg6: memref<2x8x256xf32, #tpu.memory_space<vmem>>, %arg7: memref<1x1xf32, #tpu.memory_space<smem>>, %arg8: memref<8x648xf32, #tpu.memory_space<vmem>>, %arg9: memref<8x610xf32, #tpu.memory_space<vmem>>) attributes {dimension_semantics = [], scalar_prefetch = 0 : i64, scratch_operands = 2 : i64, tpu.core_type = #tpu.core_type<tc>} {
    %c0 = arith.constant 0 : index
    %c0_0 = arith.constant 0 : index
    %0 = vector.load %arg1[%c0, %c0_0] : memref<1x610xf32, #tpu.memory_space<vmem>>, vector<1x610xf32>
    %c0_1 = arith.constant 0 : index
    %c0_2 = arith.constant 0 : index
    %1 = vector.load %arg0[%c0_1, %c0_2] : memref<4x648xf32, #tpu.memory_space<vmem>>, vector<4x610xf32>
    %c0_3 = arith.constant 0 : index
    %c0_4 = arith.constant 0 : index
    %c0_5 = arith.constant 0 : index
    %2 = vector.load %arg2[%c0_3, %c0_4, %c0_5] : memref<9x8x4xf32, #tpu.memory_space<vmem>>, vector<1x8x4xf32>
    %3 = vector.shape_cast %2 : vector<1x8x4xf32> to vector<8x4xf32>
    %cst = arith.constant dense<0.000000e+00> : vector<8x610xf32>
    %4 = tpu.matmul %3, %1, %cst {dimension_numbers = #tpu.dot_dimension_numbers<[1], [0], [0], [1], [0, 0, 1, 1], [], []>} : vector<8x4xf32>, vector<4x610xf32>, vector<8x610xf32> -> vector<8x610xf32>
    %c0_6 = arith.constant 0 : index
    %c1 = arith.constant 1 : index
    %5 = vector.load %arg0[%c0_6, %c1] : memref<4x648xf32, #tpu.memory_space<vmem>>, vector<4x610xf32>
    %c1_7 = arith.constant 1 : index
    %c0_8 = arith.constant 0 : index
    %c0_9 = arith.constant 0 : index
    %6 = vector.load %arg2[%c1_7, %c0_8, %c0_9] : memref<9x8x4xf32, #tpu.memory_space<vmem>>, vector<1x8x4xf32>
    %7 = vector.shape_cast %6 : vector<1x8x4xf32> to vector<8x4xf32>
    %cst_10 = arith.constant dense<0.000000e+00> : vector<8x610xf32>
    %8 = tpu.matmul %7, %5, %cst_10 {dimension_numbers = #tpu.dot_dimension_numbers<[1], [0], [0], [1], [0, 0, 1, 1], [], []>} : vector<8x4xf32>, vector<4x610xf32>, vector<8x610xf32> -> vector<8x610xf32>
    %9 = arith.addf %4, %8 : vector<8x610xf32>
    %c0_11 = arith.constant 0 : index
    %c2 = arith.constant 2 : index
    %10 = vector.load %arg0[%c0_11, %c2] : memref<4x648xf32, #tpu.memory_space<vmem>>, vector<4x610xf32>
    %c2_12 = arith.constant 2 : index
    %c0_13 = arith.constant 0 : index
    %c0_14 = arith.constant 0 : index
    %11 = vector.load %arg2[%c2_12, %c0_13, %c0_14] : memref<9x8x4xf32, #tpu.memory_space<vmem>>, vector<1x8x4xf32>
    %12 = vector.shape_cast %11 : vector<1x8x4xf32> to vector<8x4xf32>
    %cst_15 = arith.constant dense<0.000000e+00> : vector<8x610xf32>
    %13 = tpu.matmul %12, %10, %cst_15 {dimension_numbers = #tpu.dot_dimension_numbers<[1], [0], [0], [1], [0, 0, 1, 1], [], []>} : vector<8x4xf32>, vector<4x610xf32>, vector<8x610xf32> -> vector<8x610xf32>
    %14 = arith.addf %9, %13 : vector<8x610xf32>
    %c0_16 = arith.constant 0 : index
    %c18 = arith.constant 18 : index
    %15 = vector.load %arg0[%c0_16, %c18] : memref<4x648xf32, #tpu.memory_space<vmem>>, vector<4x610xf32>
    %c3 = arith.constant 3 : index
    %c0_17 = arith.constant 0 : index
    %c0_18 = arith.constant 0 : index
    %16 = vector.load %arg2[%c3, %c0_17, %c0_18] : memref<9x8x4xf32, #tpu.memory_space<vmem>>, vector<1x8x4xf32>
    %17 = vector.shape_cast %16 : vector<1x8x4xf32> to vector<8x4xf32>
    %cst_19 = arith.constant dense<0.000000e+00> : vector<8x610xf32>
    %18 = tpu.matmul %17, %15, %cst_19 {dimension_numbers = #tpu.dot_dimension_numbers<[1], [0], [0], [1], [0, 0, 1, 1], [], []>} : vector<8x4xf32>, vector<4x610xf32>, vector<8x610xf32> -> vector<8x610xf32>
    %19 = arith.addf %14, %18 : vector<8x610xf32>
    %c0_20 = arith.constant 0 : index
    %c19 = arith.constant 19 : index
    %20 = vector.load %arg0[%c0_20, %c19] : memref<4x648xf32, #tpu.memory_space<vmem>>, vector<4x610xf32>
    %c4 = arith.constant 4 : index
    %c0_21 = arith.constant 0 : index
    %c0_22 = arith.constant 0 : index
    %21 = vector.load %arg2[%c4, %c0_21, %c0_22] : memref<9x8x4xf32, #tpu.memory_space<vmem>>, vector<1x8x4xf32>
    %22 = vector.shape_cast %21 : vector<1x8x4xf32> to vector<8x4xf32>
    %cst_23 = arith.constant dense<0.000000e+00> : vector<8x610xf32>
    %23 = tpu.matmul %22, %20, %cst_23 {dimension_numbers = #tpu.dot_dimension_numbers<[1], [0], [0], [1], [0, 0, 1, 1], [], []>} : vector<8x4xf32>, vector<4x610xf32>, vector<8x610xf32> -> vector<8x610xf32>
    %24 = arith.addf %19, %23 : vector<8x610xf32>
    %c0_24 = arith.constant 0 : index
    %c20 = arith.constant 20 : index
    %25 = vector.load %arg0[%c0_24, %c20] : memref<4x648xf32, #tpu.memory_space<vmem>>, vector<4x610xf32>
    %c5 = arith.constant 5 : index
    %c0_25 = arith.constant 0 : index
    %c0_26 = arith.constant 0 : index
    %26 = vector.load %arg2[%c5, %c0_25, %c0_26] : memref<9x8x4xf32, #tpu.memory_space<vmem>>, vector<1x8x4xf32>
    %27 = vector.shape_cast %26 : vector<1x8x4xf32> to vector<8x4xf32>
    %cst_27 = arith.constant dense<0.000000e+00> : vector<8x610xf32>
    %28 = tpu.matmul %27, %25, %cst_27 {dimension_numbers = #tpu.dot_dimension_numbers<[1], [0], [0], [1], [0, 0, 1, 1], [], []>} : vector<8x4xf32>, vector<4x610xf32>, vector<8x610xf32> -> vector<8x610xf32>
    %29 = arith.addf %24, %28 : vector<8x610xf32>
    %c0_28 = arith.constant 0 : index
    %c36 = arith.constant 36 : index
    %30 = vector.load %arg0[%c0_28, %c36] : memref<4x648xf32, #tpu.memory_space<vmem>>, vector<4x610xf32>
    %c6 = arith.constant 6 : index
    %c0_29 = arith.constant 0 : index
    %c0_30 = arith.constant 0 : index
    %31 = vector.load %arg2[%c6, %c0_29, %c0_30] : memref<9x8x4xf32, #tpu.memory_space<vmem>>, vector<1x8x4xf32>
    %32 = vector.shape_cast %31 : vector<1x8x4xf32> to vector<8x4xf32>
    %cst_31 = arith.constant dense<0.000000e+00> : vector<8x610xf32>
    %33 = tpu.matmul %32, %30, %cst_31 {dimension_numbers = #tpu.dot_dimension_numbers<[1], [0], [0], [1], [0, 0, 1, 1], [], []>} : vector<8x4xf32>, vector<4x610xf32>, vector<8x610xf32> -> vector<8x610xf32>
    %34 = arith.addf %29, %33 : vector<8x610xf32>
    %c0_32 = arith.constant 0 : index
    %c37 = arith.constant 37 : index
    %35 = vector.load %arg0[%c0_32, %c37] : memref<4x648xf32, #tpu.memory_space<vmem>>, vector<4x610xf32>
    %c7 = arith.constant 7 : index
    %c0_33 = arith.constant 0 : index
    %c0_34 = arith.constant 0 : index
    %36 = vector.load %arg2[%c7, %c0_33, %c0_34] : memref<9x8x4xf32, #tpu.memory_space<vmem>>, vector<1x8x4xf32>
    %37 = vector.shape_cast %36 : vector<1x8x4xf32> to vector<8x4xf32>
    %cst_35 = arith.constant dense<0.000000e+00> : vector<8x610xf32>
    %38 = tpu.matmul %37, %35, %cst_35 {dimension_numbers = #tpu.dot_dimension_numbers<[1], [0], [0], [1], [0, 0, 1, 1], [], []>} : vector<8x4xf32>, vector<4x610xf32>, vector<8x610xf32> -> vector<8x610xf32>
    %39 = arith.addf %34, %38 : vector<8x610xf32>
    %c0_36 = arith.constant 0 : index
    %c38 = arith.constant 38 : index
    %40 = vector.load %arg0[%c0_36, %c38] : memref<4x648xf32, #tpu.memory_space<vmem>>, vector<4x610xf32>
    %c8 = arith.constant 8 : index
    %c0_37 = arith.constant 0 : index
    %c0_38 = arith.constant 0 : index
    %41 = vector.load %arg2[%c8, %c0_37, %c0_38] : memref<9x8x4xf32, #tpu.memory_space<vmem>>, vector<1x8x4xf32>
    %42 = vector.shape_cast %41 : vector<1x8x4xf32> to vector<8x4xf32>
    %cst_39 = arith.constant dense<0.000000e+00> : vector<8x610xf32>
    %43 = tpu.matmul %42, %40, %cst_39 {dimension_numbers = #tpu.dot_dimension_numbers<[1], [0], [0], [1], [0, 0, 1, 1], [], []>} : vector<8x4xf32>, vector<4x610xf32>, vector<8x610xf32> -> vector<8x610xf32>
    %44 = arith.addf %39, %43 : vector<8x610xf32>
    %c0_40 = arith.constant 0 : index
    %c0_41 = arith.constant 0 : index
    %45 = vector.load %arg3[%c0_40, %c0_41] : memref<8x1xf32, #tpu.memory_space<vmem>>, vector<8x1xf32>
    %46 = vector.broadcast %45 : vector<8x1xf32> to vector<8x610xf32>
    %47 = arith.addf %44, %46 : vector<8x610xf32>
    %cst_42 = arith.constant 0.000000e+00 : f32
    %48 = vector.broadcast %cst_42 : f32 to vector<8x610xf32>
    %49 = arith.maximumf %47, %48 : vector<8x610xf32>
    %50 = vector.broadcast %0 : vector<1x610xf32> to vector<8x610xf32>
    %51 = arith.mulf %49, %50 : vector<8x610xf32>
    %cst_43 = arith.constant 0.000000e+00 : f32
    %52 = vector.broadcast %cst_43 : f32 to vector<8x648xf32>
    %c0_44 = arith.constant 0 : index
    %c0_45 = arith.constant 0 : index
    %53 = vector.load %arg8[%c0_44, %c0_45] : memref<8x648xf32, #tpu.memory_space<vmem>>, vector<8x648xf32>
    tpu.vector_store %arg8[%c0_44, %c0_45], %52 {strides = array<i32>} : memref<8x648xf32, #tpu.memory_space<vmem>>, vector<8x648xf32>,
    %c0_46 = arith.constant 0 : index
    %c19_47 = arith.constant 19 : index
    %54 = vector.load %arg8[%c0_46, %c19_47] : memref<8x648xf32, #tpu.memory_space<vmem>>, vector<8x610xf32>
    tpu.vector_store %arg8[%c0_46, %c19_47], %51 {strides = array<i32>} : memref<8x648xf32, #tpu.memory_space<vmem>>, vector<8x610xf32>,
    %c0_48 = arith.constant 0 : index
    %c0_49 = arith.constant 0 : index
    %55 = vector.load %arg8[%c0_48, %c0_49] : memref<8x648xf32, #tpu.memory_space<vmem>>, vector<8x610xf32>
    %c0_50 = arith.constant 0 : index
    %c0_51 = arith.constant 0 : index
    %c0_52 = arith.constant 0 : index
    %56 = vector.load %arg4[%c0_50, %c0_51, %c0_52] : memref<9x8x8xf32, #tpu.memory_space<vmem>>, vector<1x8x8xf32>
    %57 = vector.shape_cast %56 : vector<1x8x8xf32> to vector<8x8xf32>
    %cst_53 = arith.constant dense<0.000000e+00> : vector<8x610xf32>
    %58 = tpu.matmul %57, %55, %cst_53 {dimension_numbers = #tpu.dot_dimension_numbers<[1], [0], [0], [1], [0, 0, 1, 1], [], []>} : vector<8x8xf32>, vector<8x610xf32>, vector<8x610xf32> -> vector<8x610xf32>
    %c0_54 = arith.constant 0 : index
    %c1_55 = arith.constant 1 : index
    %59 = vector.load %arg8[%c0_54, %c1_55] : memref<8x648xf32, #tpu.memory_space<vmem>>, vector<8x610xf32>
    %c1_56 = arith.constant 1 : index
    %c0_57 = arith.constant 0 : index
    %c0_58 = arith.constant 0 : index
    %60 = vector.load %arg4[%c1_56, %c0_57, %c0_58] : memref<9x8x8xf32, #tpu.memory_space<vmem>>, vector<1x8x8xf32>
    %61 = vector.shape_cast %60 : vector<1x8x8xf32> to vector<8x8xf32>
    %cst_59 = arith.constant dense<0.000000e+00> : vector<8x610xf32>
    %62 = tpu.matmul %61, %59, %cst_59 {dimension_numbers = #tpu.dot_dimension_numbers<[1], [0], [0], [1], [0, 0, 1, 1], [], []>} : vector<8x8xf32>, vector<8x610xf32>, vector<8x610xf32> -> vector<8x610xf32>
    %63 = arith.addf %58, %62 : vector<8x610xf32>
    %c0_60 = arith.constant 0 : index
    %c2_61 = arith.constant 2 : index
    %64 = vector.load %arg8[%c0_60, %c2_61] : memref<8x648xf32, #tpu.memory_space<vmem>>, vector<8x610xf32>
    %c2_62 = arith.constant 2 : index
    %c0_63 = arith.constant 0 : index
    %c0_64 = arith.constant 0 : index
    %65 = vector.load %arg4[%c2_62, %c0_63, %c0_64] : memref<9x8x8xf32, #tpu.memory_space<vmem>>, vector<1x8x8xf32>
    %66 = vector.shape_cast %65 : vector<1x8x8xf32> to vector<8x8xf32>
    %cst_65 = arith.constant dense<0.000000e+00> : vector<8x610xf32>
    %67 = tpu.matmul %66, %64, %cst_65 {dimension_numbers = #tpu.dot_dimension_numbers<[1], [0], [0], [1], [0, 0, 1, 1], [], []>} : vector<8x8xf32>, vector<8x610xf32>, vector<8x610xf32> -> vector<8x610xf32>
    %68 = arith.addf %63, %67 : vector<8x610xf32>
    %c0_66 = arith.constant 0 : index
    %c18_67 = arith.constant 18 : index
    %69 = vector.load %arg8[%c0_66, %c18_67] : memref<8x648xf32, #tpu.memory_space<vmem>>, vector<8x610xf32>
    %c3_68 = arith.constant 3 : index
    %c0_69 = arith.constant 0 : index
    %c0_70 = arith.constant 0 : index
    %70 = vector.load %arg4[%c3_68, %c0_69, %c0_70] : memref<9x8x8xf32, #tpu.memory_space<vmem>>, vector<1x8x8xf32>
    %71 = vector.shape_cast %70 : vector<1x8x8xf32> to vector<8x8xf32>
    %cst_71 = arith.constant dense<0.000000e+00> : vector<8x610xf32>
    %72 = tpu.matmul %71, %69, %cst_71 {dimension_numbers = #tpu.dot_dimension_numbers<[1], [0], [0], [1], [0, 0, 1, 1], [], []>} : vector<8x8xf32>, vector<8x610xf32>, vector<8x610xf32> -> vector<8x610xf32>
    %73 = arith.addf %68, %72 : vector<8x610xf32>
    %c0_72 = arith.constant 0 : index
    %c19_73 = arith.constant 19 : index
    %74 = vector.load %arg8[%c0_72, %c19_73] : memref<8x648xf32, #tpu.memory_space<vmem>>, vector<8x610xf32>
    %c4_74 = arith.constant 4 : index
    %c0_75 = arith.constant 0 : index
    %c0_76 = arith.constant 0 : index
    %75 = vector.load %arg4[%c4_74, %c0_75, %c0_76] : memref<9x8x8xf32, #tpu.memory_space<vmem>>, vector<1x8x8xf32>
    %76 = vector.shape_cast %75 : vector<1x8x8xf32> to vector<8x8xf32>
    %cst_77 = arith.constant dense<0.000000e+00> : vector<8x610xf32>
    %77 = tpu.matmul %76, %74, %cst_77 {dimension_numbers = #tpu.dot_dimension_numbers<[1], [0], [0], [1], [0, 0, 1, 1], [], []>} : vector<8x8xf32>, vector<8x610xf32>, vector<8x610xf32> -> vector<8x610xf32>
    %78 = arith.addf %73, %77 : vector<8x610xf32>
    %c0_78 = arith.constant 0 : index
    %c20_79 = arith.constant 20 : index
    %79 = vector.load %arg8[%c0_78, %c20_79] : memref<8x648xf32, #tpu.memory_space<vmem>>, vector<8x610xf32>
    %c5_80 = arith.constant 5 : index
    %c0_81 = arith.constant 0 : index
    %c0_82 = arith.constant 0 : index
    %80 = vector.load %arg4[%c5_80, %c0_81, %c0_82] : memref<9x8x8xf32, #tpu.memory_space<vmem>>, vector<1x8x8xf32>
    %81 = vector.shape_cast %80 : vector<1x8x8xf32> to vector<8x8xf32>
    %cst_83 = arith.constant dense<0.000000e+00> : vector<8x610xf32>
    %82 = tpu.matmul %81, %79, %cst_83 {dimension_numbers = #tpu.dot_dimension_numbers<[1], [0], [0], [1], [0, 0, 1, 1], [], []>} : vector<8x8xf32>, vector<8x610xf32>, vector<8x610xf32> -> vector<8x610xf32>
    %83 = arith.addf %78, %82 : vector<8x610xf32>
    %c0_84 = arith.constant 0 : index
    %c36_85 = arith.constant 36 : index
    %84 = vector.load %arg8[%c0_84, %c36_85] : memref<8x648xf32, #tpu.memory_space<vmem>>, vector<8x610xf32>
    %c6_86 = arith.constant 6 : index
    %c0_87 = arith.constant 0 : index
    %c0_88 = arith.constant 0 : index
    %85 = vector.load %arg4[%c6_86, %c0_87, %c0_88] : memref<9x8x8xf32, #tpu.memory_space<vmem>>, vector<1x8x8xf32>
    %86 = vector.shape_cast %85 : vector<1x8x8xf32> to vector<8x8xf32>
    %cst_89 = arith.constant dense<0.000000e+00> : vector<8x610xf32>
    %87 = tpu.matmul %86, %84, %cst_89 {dimension_numbers = #tpu.dot_dimension_numbers<[1], [0], [0], [1], [0, 0, 1, 1], [], []>} : vector<8x8xf32>, vector<8x610xf32>, vector<8x610xf32> -> vector<8x610xf32>
    %88 = arith.addf %83, %87 : vector<8x610xf32>
    %c0_90 = arith.constant 0 : index
    %c37_91 = arith.constant 37 : index
    %89 = vector.load %arg8[%c0_90, %c37_91] : memref<8x648xf32, #tpu.memory_space<vmem>>, vector<8x610xf32>
    %c7_92 = arith.constant 7 : index
    %c0_93 = arith.constant 0 : index
    %c0_94 = arith.constant 0 : index
    %90 = vector.load %arg4[%c7_92, %c0_93, %c0_94] : memref<9x8x8xf32, #tpu.memory_space<vmem>>, vector<1x8x8xf32>
    %91 = vector.shape_cast %90 : vector<1x8x8xf32> to vector<8x8xf32>
    %cst_95 = arith.constant dense<0.000000e+00> : vector<8x610xf32>
    %92 = tpu.matmul %91, %89, %cst_95 {dimension_numbers = #tpu.dot_dimension_numbers<[1], [0], [0], [1], [0, 0, 1, 1], [], []>} : vector<8x8xf32>, vector<8x610xf32>, vector<8x610xf32> -> vector<8x610xf32>
    %93 = arith.addf %88, %92 : vector<8x610xf32>
    %c0_96 = arith.constant 0 : index
    %c38_97 = arith.constant 38 : index
    %94 = vector.load %arg8[%c0_96, %c38_97] : memref<8x648xf32, #tpu.memory_space<vmem>>, vector<8x610xf32>
    %c8_98 = arith.constant 8 : index
    %c0_99 = arith.constant 0 : index
    %c0_100 = arith.constant 0 : index
    %95 = vector.load %arg4[%c8_98, %c0_99, %c0_100] : memref<9x8x8xf32, #tpu.memory_space<vmem>>, vector<1x8x8xf32>
    %96 = vector.shape_cast %95 : vector<1x8x8xf32> to vector<8x8xf32>
    %cst_101 = arith.constant dense<0.000000e+00> : vector<8x610xf32>
    %97 = tpu.matmul %96, %94, %cst_101 {dimension_numbers = #tpu.dot_dimension_numbers<[1], [0], [0], [1], [0, 0, 1, 1], [], []>} : vector<8x8xf32>, vector<8x610xf32>, vector<8x610xf32> -> vector<8x610xf32>
    %98 = arith.addf %93, %97 : vector<8x610xf32>
    %c0_102 = arith.constant 0 : index
    %c0_103 = arith.constant 0 : index
    %99 = vector.load %arg5[%c0_102, %c0_103] : memref<8x1xf32, #tpu.memory_space<vmem>>, vector<8x1xf32>
    %100 = vector.broadcast %99 : vector<8x1xf32> to vector<8x610xf32>
    %101 = arith.addf %98, %100 : vector<8x610xf32>
    %cst_104 = arith.constant dense<0xFF800000> : vector<610xf32>
    %102 = vector.multi_reduction <maximumf>, %101, %cst_104 [0] : vector<8x610xf32> to vector<610xf32>
    %103 = vector.shape_cast %102 : vector<610xf32> to vector<1x610xf32>
    %104 = vector.broadcast %103 : vector<1x610xf32> to vector<8x610xf32>
    %105 = arith.subf %101, %104 : vector<8x610xf32>
    %106 = math.exp %105 : vector<8x610xf32>
    %cst_105 = arith.constant dense<0.000000e+00> : vector<610xf32>
    %107 = vector.multi_reduction <add>, %106, %cst_105 [0] : vector<8x610xf32> to vector<610xf32>
    %108 = vector.shape_cast %107 : vector<610xf32> to vector<1x610xf32>
    %109 = tpu.reciprocal %108 {approx = true} : vector<1x610xf32> -> vector<1x610xf32>
    %110 = vector.broadcast %109 : vector<1x610xf32> to vector<8x610xf32>
    %111 = arith.mulf %106, %110 : vector<8x610xf32>
    %112 = vector.broadcast %103 : vector<1x610xf32> to vector<8x610xf32>
    %113 = arith.subf %101, %112 : vector<8x610xf32>
    %114 = math.log %108 : vector<1x610xf32>
    %115 = vector.broadcast %114 : vector<1x610xf32> to vector<8x610xf32>
    %116 = arith.subf %113, %115 : vector<8x610xf32>
    %117 = arith.mulf %111, %116 : vector<8x610xf32>
    %118 = vector.broadcast %0 : vector<1x610xf32> to vector<8x610xf32>
    %119 = arith.mulf %117, %118 : vector<8x610xf32>
    %120 = vector.shape_cast %119 : vector<8x610xf32> to vector<1x8x610xf32>
    %cst_106 = arith.constant dense<0.000000e+00> : vector<1xf32>
    %121 = vector.multi_reduction <add>, %120, %cst_106 [1, 2] : vector<1x8x610xf32> to vector<1xf32>
    %122 = vector.shape_cast %121 : vector<1xf32> to vector<1x1x1xf32>
    %123 = vector.extract %122[0, 0, 0] : f32 from vector<1x1x1xf32>
    %cst_107 = arith.constant 0.000000e+00 : f32
    %124 = arith.subf %cst_107, %123 : f32
    %cst_108 = arith.constant 0.001953125 : f32
    %125 = arith.mulf %124, %cst_108 : f32
    %c0_109 = arith.constant 0 : index
    %c0_110 = arith.constant 0 : index
    %126 = memref.load %arg7[%c0_109, %c0_110] : memref<1x1xf32, #tpu.memory_space<smem>>
    memref.store %125, %arg7[%c0_109, %c0_110] : memref<1x1xf32, #tpu.memory_space<smem>>
    %c0_111 = arith.constant 0 : index
    %c0_112 = arith.constant 0 : index
    %127 = vector.load %arg9[%c0_111, %c0_112] : memref<8x610xf32, #tpu.memory_space<vmem>>, vector<8x610xf32>
    tpu.vector_store %arg9[%c0_111, %c0_112], %111 {strides = array<i32>} : memref<8x610xf32, #tpu.memory_space<vmem>>, vector<8x610xf32>,
    %c0_113 = arith.constant 0 : index
    %c0_114 = arith.constant 0 : index
    %128 = vector.load %arg9[%c0_113, %c0_114] : memref<8x610xf32, #tpu.memory_space<vmem>>, vector<8x16xf32>
    %c0_115 = arith.constant 0 : index
    %c0_116 = arith.constant 0 : index
    %c0_117 = arith.constant 0 : index
    %129 = vector.load %arg6[%c0_115, %c0_116, %c0_117] : memref<2x8x256xf32, #tpu.memory_space<vmem>>, vector<1x8x16xf32>
    %130 = vector.shape_cast %129 : vector<1x8x16xf32> to vector<8x16xf32>
    %131 = vector.shape_cast %128 : vector<8x16xf32> to vector<1x8x16xf32>
    tpu.vector_store %arg6[%c0_115, %c0_116, %c0_117], %131 {strides = array<i32>} : memref<2x8x256xf32, #tpu.memory_space<vmem>>, vector<1x8x16xf32>,
    %c0_118 = arith.constant 0 : index
    %c18_119 = arith.constant 18 : index
    %132 = vector.load %arg9[%c0_118, %c18_119] : memref<8x610xf32, #tpu.memory_space<vmem>>, vector<8x16xf32>
    %c0_120 = arith.constant 0 : index
    %c0_121 = arith.constant 0 : index
    %c16 = arith.constant 16 : index
    %133 = vector.load %arg6[%c0_120, %c0_121, %c16] : memref<2x8x256xf32, #tpu.memory_space<vmem>>, vector<1x8x16xf32>
    %134 = vector.shape_cast %133 : vector<1x8x16xf32> to vector<8x16xf32>
    %135 = vector.shape_cast %132 : vector<8x16xf32> to vector<1x8x16xf32>
    tpu.vector_store %arg6[%c0_120, %c0_121, %c16], %135 {strides = array<i32>} : memref<2x8x256xf32, #tpu.memory_space<vmem>>, vector<1x8x16xf32>,
    %c0_122 = arith.constant 0 : index
    %c36_123 = arith.constant 36 : index
    %136 = vector.load %arg9[%c0_122, %c36_123] : memref<8x610xf32, #tpu.memory_space<vmem>>, vector<8x16xf32>
    %c0_124 = arith.constant 0 : index
    %c0_125 = arith.constant 0 : index
    %c32 = arith.constant 32 : index
    %137 = vector.load %arg6[%c0_124, %c0_125, %c32] : memref<2x8x256xf32, #tpu.memory_space<vmem>>, vector<1x8x16xf32>
    %138 = vector.shape_cast %137 : vector<1x8x16xf32> to vector<8x16xf32>
    %139 = vector.shape_cast %136 : vector<8x16xf32> to vector<1x8x16xf32>
    tpu.vector_store %arg6[%c0_124, %c0_125, %c32], %139 {strides = array<i32>} : memref<2x8x256xf32, #tpu.memory_space<vmem>>, vector<1x8x16xf32>,
    %c0_126 = arith.constant 0 : index
    %c54 = arith.constant 54 : index
    %140 = vector.load %arg9[%c0_126, %c54] : memref<8x610xf32, #tpu.memory_space<vmem>>, vector<8x16xf32>
    %c0_127 = arith.constant 0 : index
    %c0_128 = arith.constant 0 : index
    %c48 = arith.constant 48 : index
    %141 = vector.load %arg6[%c0_127, %c0_128, %c48] : memref<2x8x256xf32, #tpu.memory_space<vmem>>, vector<1x8x16xf32>
    %142 = vector.shape_cast %141 : vector<1x8x16xf32> to vector<8x16xf32>
    %143 = vector.shape_cast %140 : vector<8x16xf32> to vector<1x8x16xf32>
    tpu.vector_store %arg6[%c0_127, %c0_128, %c48], %143 {strides = array<i32>} : memref<2x8x256xf32, #tpu.memory_space<vmem>>, vector<1x8x16xf32>,
    %c0_129 = arith.constant 0 : index
    %c72 = arith.constant 72 : index
    %144 = vector.load %arg9[%c0_129, %c72] : memref<8x610xf32, #tpu.memory_space<vmem>>, vector<8x16xf32>
    %c0_130 = arith.constant 0 : index
    %c0_131 = arith.constant 0 : index
    %c64 = arith.constant 64 : index
    %145 = vector.load %arg6[%c0_130, %c0_131, %c64] : memref<2x8x256xf32, #tpu.memory_space<vmem>>, vector<1x8x16xf32>
    %146 = vector.shape_cast %145 : vector<1x8x16xf32> to vector<8x16xf32>
    %147 = vector.shape_cast %144 : vector<8x16xf32> to vector<1x8x16xf32>
    tpu.vector_store %arg6[%c0_130, %c0_131, %c64], %147 {strides = array<i32>} : memref<2x8x256xf32, #tpu.memory_space<vmem>>, vector<1x8x16xf32>,
    %c0_132 = arith.constant 0 : index
    %c90 = arith.constant 90 : index
    %148 = vector.load %arg9[%c0_132, %c90] : memref<8x610xf32, #tpu.memory_space<vmem>>, vector<8x16xf32>
    %c0_133 = arith.constant 0 : index
    %c0_134 = arith.constant 0 : index
    %c80 = arith.constant 80 : index
    %149 = vector.load %arg6[%c0_133, %c0_134, %c80] : memref<2x8x256xf32, #tpu.memory_space<vmem>>, vector<1x8x16xf32>
    %150 = vector.shape_cast %149 : vector<1x8x16xf32> to vector<8x16xf32>
    %151 = vector.shape_cast %148 : vector<8x16xf32> to vector<1x8x16xf32>
    tpu.vector_store %arg6[%c0_133, %c0_134, %c80], %151 {strides = array<i32>} : memref<2x8x256xf32, #tpu.memory_space<vmem>>, vector<1x8x16xf32>,
    %c0_135 = arith.constant 0 : index
    %c108 = arith.constant 108 : index
    %152 = vector.load %arg9[%c0_135, %c108] : memref<8x610xf32, #tpu.memory_space<vmem>>, vector<8x16xf32>
    %c0_136 = arith.constant 0 : index
    %c0_137 = arith.constant 0 : index
    %c96 = arith.constant 96 : index
    %153 = vector.load %arg6[%c0_136, %c0_137, %c96] : memref<2x8x256xf32, #tpu.memory_space<vmem>>, vector<1x8x16xf32>
    %154 = vector.shape_cast %153 : vector<1x8x16xf32> to vector<8x16xf32>
    %155 = vector.shape_cast %152 : vector<8x16xf32> to vector<1x8x16xf32>
    tpu.vector_store %arg6[%c0_136, %c0_137, %c96], %155 {strides = array<i32>} : memref<2x8x256xf32, #tpu.memory_space<vmem>>, vector<1x8x16xf32>,
    %c0_138 = arith.constant 0 : index
    %c126 = arith.constant 126 : index
    %156 = vector.load %arg9[%c0_138, %c126] : memref<8x610xf32, #tpu.memory_space<vmem>>, vector<8x16xf32>
    %c0_139 = arith.constant 0 : index
    %c0_140 = arith.constant 0 : index
    %c112 = arith.constant 112 : index
    %157 = vector.load %arg6[%c0_139, %c0_140, %c112] : memref<2x8x256xf32, #tpu.memory_space<vmem>>, vector<1x8x16xf32>
    %158 = vector.shape_cast %157 : vector<1x8x16xf32> to vector<8x16xf32>
    %159 = vector.shape_cast %156 : vector<8x16xf32> to vector<1x8x16xf32>
    tpu.vector_store %arg6[%c0_139, %c0_140, %c112], %159 {strides = array<i32>} : memref<2x8x256xf32, #tpu.memory_space<vmem>>, vector<1x8x16xf32>,
    %c0_141 = arith.constant 0 : index
    %c144 = arith.constant 144 : index
    %160 = vector.load %arg9[%c0_141, %c144] : memref<8x610xf32, #tpu.memory_space<vmem>>, vector<8x16xf32>
    %c0_142 = arith.constant 0 : index
    %c0_143 = arith.constant 0 : index
    %c128 = arith.constant 128 : index
    %161 = vector.load %arg6[%c0_142, %c0_143, %c128] : memref<2x8x256xf32, #tpu.memory_space<vmem>>, vector<1x8x16xf32>
    %162 = vector.shape_cast %161 : vector<1x8x16xf32> to vector<8x16xf32>
    %163 = vector.shape_cast %160 : vector<8x16xf32> to vector<1x8x16xf32>
    tpu.vector_store %arg6[%c0_142, %c0_143, %c128], %163 {strides = array<i32>} : memref<2x8x256xf32, #tpu.memory_space<vmem>>, vector<1x8x16xf32>,
    %c0_144 = arith.constant 0 : index
    %c162 = arith.constant 162 : index
    %164 = vector.load %arg9[%c0_144, %c162] : memref<8x610xf32, #tpu.memory_space<vmem>>, vector<8x16xf32>
    %c0_145 = arith.constant 0 : index
    %c0_146 = arith.constant 0 : index
    %c144_147 = arith.constant 144 : index
    %165 = vector.load %arg6[%c0_145, %c0_146, %c144_147] : memref<2x8x256xf32, #tpu.memory_space<vmem>>, vector<1x8x16xf32>
    %166 = vector.shape_cast %165 : vector<1x8x16xf32> to vector<8x16xf32>
    %167 = vector.shape_cast %164 : vector<8x16xf32> to vector<1x8x16xf32>
    tpu.vector_store %arg6[%c0_145, %c0_146, %c144_147], %167 {strides = array<i32>} : memref<2x8x256xf32, #tpu.memory_space<vmem>>, vector<1x8x16xf32>,
    %c0_148 = arith.constant 0 : index
    %c180 = arith.constant 180 : index
    %168 = vector.load %arg9[%c0_148, %c180] : memref<8x610xf32, #tpu.memory_space<vmem>>, vector<8x16xf32>
    %c0_149 = arith.constant 0 : index
    %c0_150 = arith.constant 0 : index
    %c160 = arith.constant 160 : index
    %169 = vector.load %arg6[%c0_149, %c0_150, %c160] : memref<2x8x256xf32, #tpu.memory_space<vmem>>, vector<1x8x16xf32>
    %170 = vector.shape_cast %169 : vector<1x8x16xf32> to vector<8x16xf32>
    %171 = vector.shape_cast %168 : vector<8x16xf32> to vector<1x8x16xf32>
    tpu.vector_store %arg6[%c0_149, %c0_150, %c160], %171 {strides = array<i32>} : memref<2x8x256xf32, #tpu.memory_space<vmem>>, vector<1x8x16xf32>,
    %c0_151 = arith.constant 0 : index
    %c198 = arith.constant 198 : index
    %172 = vector.load %arg9[%c0_151, %c198] : memref<8x610xf32, #tpu.memory_space<vmem>>, vector<8x16xf32>
    %c0_152 = arith.constant 0 : index
    %c0_153 = arith.constant 0 : index
    %c176 = arith.constant 176 : index
    %173 = vector.load %arg6[%c0_152, %c0_153, %c176] : memref<2x8x256xf32, #tpu.memory_space<vmem>>, vector<1x8x16xf32>
    %174 = vector.shape_cast %173 : vector<1x8x16xf32> to vector<8x16xf32>
    %175 = vector.shape_cast %172 : vector<8x16xf32> to vector<1x8x16xf32>
    tpu.vector_store %arg6[%c0_152, %c0_153, %c176], %175 {strides = array<i32>} : memref<2x8x256xf32, #tpu.memory_space<vmem>>, vector<1x8x16xf32>,
    %c0_154 = arith.constant 0 : index
    %c216 = arith.constant 216 : index
    %176 = vector.load %arg9[%c0_154, %c216] : memref<8x610xf32, #tpu.memory_space<vmem>>, vector<8x16xf32>
    %c0_155 = arith.constant 0 : index
    %c0_156 = arith.constant 0 : index
    %c192 = arith.constant 192 : index
    %177 = vector.load %arg6[%c0_155, %c0_156, %c192] : memref<2x8x256xf32, #tpu.memory_space<vmem>>, vector<1x8x16xf32>
    %178 = vector.shape_cast %177 : vector<1x8x16xf32> to vector<8x16xf32>
    %179 = vector.shape_cast %176 : vector<8x16xf32> to vector<1x8x16xf32>
    tpu.vector_store %arg6[%c0_155, %c0_156, %c192], %179 {strides = array<i32>} : memref<2x8x256xf32, #tpu.memory_space<vmem>>, vector<1x8x16xf32>,
    %c0_157 = arith.constant 0 : index
    %c234 = arith.constant 234 : index
    %180 = vector.load %arg9[%c0_157, %c234] : memref<8x610xf32, #tpu.memory_space<vmem>>, vector<8x16xf32>
    %c0_158 = arith.constant 0 : index
    %c0_159 = arith.constant 0 : index
    %c208 = arith.constant 208 : index
    %181 = vector.load %arg6[%c0_158, %c0_159, %c208] : memref<2x8x256xf32, #tpu.memory_space<vmem>>, vector<1x8x16xf32>
    %182 = vector.shape_cast %181 : vector<1x8x16xf32> to vector<8x16xf32>
    %183 = vector.shape_cast %180 : vector<8x16xf32> to vector<1x8x16xf32>
    tpu.vector_store %arg6[%c0_158, %c0_159, %c208], %183 {strides = array<i32>} : memref<2x8x256xf32, #tpu.memory_space<vmem>>, vector<1x8x16xf32>,
    %c0_160 = arith.constant 0 : index
    %c252 = arith.constant 252 : index
    %184 = vector.load %arg9[%c0_160, %c252] : memref<8x610xf32, #tpu.memory_space<vmem>>, vector<8x16xf32>
    %c0_161 = arith.constant 0 : index
    %c0_162 = arith.constant 0 : index
    %c224 = arith.constant 224 : index
    %185 = vector.load %arg6[%c0_161, %c0_162, %c224] : memref<2x8x256xf32, #tpu.memory_space<vmem>>, vector<1x8x16xf32>
    %186 = vector.shape_cast %185 : vector<1x8x16xf32> to vector<8x16xf32>
    %187 = vector.shape_cast %184 : vector<8x16xf32> to vector<1x8x16xf32>
    tpu.vector_store %arg6[%c0_161, %c0_162, %c224], %187 {strides = array<i32>} : memref<2x8x256xf32, #tpu.memory_space<vmem>>, vector<1x8x16xf32>,
    %c0_163 = arith.constant 0 : index
    %c270 = arith.constant 270 : index
    %188 = vector.load %arg9[%c0_163, %c270] : memref<8x610xf32, #tpu.memory_space<vmem>>, vector<8x16xf32>
    %c0_164 = arith.constant 0 : index
    %c0_165 = arith.constant 0 : index
    %c240 = arith.constant 240 : index
    %189 = vector.load %arg6[%c0_164, %c0_165, %c240] : memref<2x8x256xf32, #tpu.memory_space<vmem>>, vector<1x8x16xf32>
    %190 = vector.shape_cast %189 : vector<1x8x16xf32> to vector<8x16xf32>
    %191 = vector.shape_cast %188 : vector<8x16xf32> to vector<1x8x16xf32>
    tpu.vector_store %arg6[%c0_164, %c0_165, %c240], %191 {strides = array<i32>} : memref<2x8x256xf32, #tpu.memory_space<vmem>>, vector<1x8x16xf32>,
    %c0_166 = arith.constant 0 : index
    %c324 = arith.constant 324 : index
    %192 = vector.load %arg9[%c0_166, %c324] : memref<8x610xf32, #tpu.memory_space<vmem>>, vector<8x16xf32>
    %c1_167 = arith.constant 1 : index
    %c0_168 = arith.constant 0 : index
    %c0_169 = arith.constant 0 : index
    %193 = vector.load %arg6[%c1_167, %c0_168, %c0_169] : memref<2x8x256xf32, #tpu.memory_space<vmem>>, vector<1x8x16xf32>
    %194 = vector.shape_cast %193 : vector<1x8x16xf32> to vector<8x16xf32>
    %195 = vector.shape_cast %192 : vector<8x16xf32> to vector<1x8x16xf32>
    tpu.vector_store %arg6[%c1_167, %c0_168, %c0_169], %195 {strides = array<i32>} : memref<2x8x256xf32, #tpu.memory_space<vmem>>, vector<1x8x16xf32>,
    %c0_170 = arith.constant 0 : index
    %c342 = arith.constant 342 : index
    %196 = vector.load %arg9[%c0_170, %c342] : memref<8x610xf32, #tpu.memory_space<vmem>>, vector<8x16xf32>
    %c1_171 = arith.constant 1 : index
    %c0_172 = arith.constant 0 : index
    %c16_173 = arith.constant 16 : index
    %197 = vector.load %arg6[%c1_171, %c0_172, %c16_173] : memref<2x8x256xf32, #tpu.memory_space<vmem>>, vector<1x8x16xf32>
    %198 = vector.shape_cast %197 : vector<1x8x16xf32> to vector<8x16xf32>
    %199 = vector.shape_cast %196 : vector<8x16xf32> to vector<1x8x16xf32>
    tpu.vector_store %arg6[%c1_171, %c0_172, %c16_173], %199 {strides = array<i32>} : memref<2x8x256xf32, #tpu.memory_space<vmem>>, vector<1x8x16xf32>,
    %c0_174 = arith.constant 0 : index
    %c360 = arith.constant 360 : index
    %200 = vector.load %arg9[%c0_174, %c360] : memref<8x610xf32, #tpu.memory_space<vmem>>, vector<8x16xf32>
    %c1_175 = arith.constant 1 : index
    %c0_176 = arith.constant 0 : index
    %c32_177 = arith.constant 32 : index
    %201 = vector.load %arg6[%c1_175, %c0_176, %c32_177] : memref<2x8x256xf32, #tpu.memory_space<vmem>>, vector<1x8x16xf32>
    %202 = vector.shape_cast %201 : vector<1x8x16xf32> to vector<8x16xf32>
    %203 = vector.shape_cast %200 : vector<8x16xf32> to vector<1x8x16xf32>
    tpu.vector_store %arg6[%c1_175, %c0_176, %c32_177], %203 {strides = array<i32>} : memref<2x8x256xf32, #tpu.memory_space<vmem>>, vector<1x8x16xf32>,
    %c0_178 = arith.constant 0 : index
    %c378 = arith.constant 378 : index
    %204 = vector.load %arg9[%c0_178, %c378] : memref<8x610xf32, #tpu.memory_space<vmem>>, vector<8x16xf32>
    %c1_179 = arith.constant 1 : index
    %c0_180 = arith.constant 0 : index
    %c48_181 = arith.constant 48 : index
    %205 = vector.load %arg6[%c1_179, %c0_180, %c48_181] : memref<2x8x256xf32, #tpu.memory_space<vmem>>, vector<1x8x16xf32>
    %206 = vector.shape_cast %205 : vector<1x8x16xf32> to vector<8x16xf32>
    %207 = vector.shape_cast %204 : vector<8x16xf32> to vector<1x8x16xf32>
    tpu.vector_store %arg6[%c1_179, %c0_180, %c48_181], %207 {strides = array<i32>} : memref<2x8x256xf32, #tpu.memory_space<vmem>>, vector<1x8x16xf32>,
    %c0_182 = arith.constant 0 : index
    %c396 = arith.constant 396 : index
    %208 = vector.load %arg9[%c0_182, %c396] : memref<8x610xf32, #tpu.memory_space<vmem>>, vector<8x16xf32>
    %c1_183 = arith.constant 1 : index
    %c0_184 = arith.constant 0 : index
    %c64_185 = arith.constant 64 : index
    %209 = vector.load %arg6[%c1_183, %c0_184, %c64_185] : memref<2x8x256xf32, #tpu.memory_space<vmem>>, vector<1x8x16xf32>
    %210 = vector.shape_cast %209 : vector<1x8x16xf32> to vector<8x16xf32>
    %211 = vector.shape_cast %208 : vector<8x16xf32> to vector<1x8x16xf32>
    tpu.vector_store %arg6[%c1_183, %c0_184, %c64_185], %211 {strides = array<i32>} : memref<2x8x256xf32, #tpu.memory_space<vmem>>, vector<1x8x16xf32>,
    %c0_186 = arith.constant 0 : index
    %c414 = arith.constant 414 : index
    %212 = vector.load %arg9[%c0_186, %c414] : memref<8x610xf32, #tpu.memory_space<vmem>>, vector<8x16xf32>
    %c1_187 = arith.constant 1 : index
    %c0_188 = arith.constant 0 : index
    %c80_189 = arith.constant 80 : index
    %213 = vector.load %arg6[%c1_187, %c0_188, %c80_189] : memref<2x8x256xf32, #tpu.memory_space<vmem>>, vector<1x8x16xf32>
    %214 = vector.shape_cast %213 : vector<1x8x16xf32> to vector<8x16xf32>
    %215 = vector.shape_cast %212 : vector<8x16xf32> to vector<1x8x16xf32>
    tpu.vector_store %arg6[%c1_187, %c0_188, %c80_189], %215 {strides = array<i32>} : memref<2x8x256xf32, #tpu.memory_space<vmem>>, vector<1x8x16xf32>,
    %c0_190 = arith.constant 0 : index
    %c432 = arith.constant 432 : index
    %216 = vector.load %arg9[%c0_190, %c432] : memref<8x610xf32, #tpu.memory_space<vmem>>, vector<8x16xf32>
    %c1_191 = arith.constant 1 : index
    %c0_192 = arith.constant 0 : index
    %c96_193 = arith.constant 96 : index
    %217 = vector.load %arg6[%c1_191, %c0_192, %c96_193] : memref<2x8x256xf32, #tpu.memory_space<vmem>>, vector<1x8x16xf32>
    %218 = vector.shape_cast %217 : vector<1x8x16xf32> to vector<8x16xf32>
    %219 = vector.shape_cast %216 : vector<8x16xf32> to vector<1x8x16xf32>
    tpu.vector_store %arg6[%c1_191, %c0_192, %c96_193], %219 {strides = array<i32>} : memref<2x8x256xf32, #tpu.memory_space<vmem>>, vector<1x8x16xf32>,
    %c0_194 = arith.constant 0 : index
    %c450 = arith.constant 450 : index
    %220 = vector.load %arg9[%c0_194, %c450] : memref<8x610xf32, #tpu.memory_space<vmem>>, vector<8x16xf32>
    %c1_195 = arith.constant 1 : index
    %c0_196 = arith.constant 0 : index
    %c112_197 = arith.constant 112 : index
    %221 = vector.load %arg6[%c1_195, %c0_196, %c112_197] : memref<2x8x256xf32, #tpu.memory_space<vmem>>, vector<1x8x16xf32>
    %222 = vector.shape_cast %221 : vector<1x8x16xf32> to vector<8x16xf32>
    %223 = vector.shape_cast %220 : vector<8x16xf32> to vector<1x8x16xf32>
    tpu.vector_store %arg6[%c1_195, %c0_196, %c112_197], %223 {strides = array<i32>} : memref<2x8x256xf32, #tpu.memory_space<vmem>>, vector<1x8x16xf32>,
    %c0_198 = arith.constant 0 : index
    %c468 = arith.constant 468 : index
    %224 = vector.load %arg9[%c0_198, %c468] : memref<8x610xf32, #tpu.memory_space<vmem>>, vector<8x16xf32>
    %c1_199 = arith.constant 1 : index
    %c0_200 = arith.constant 0 : index
    %c128_201 = arith.constant 128 : index
    %225 = vector.load %arg6[%c1_199, %c0_200, %c128_201] : memref<2x8x256xf32, #tpu.memory_space<vmem>>, vector<1x8x16xf32>
    %226 = vector.shape_cast %225 : vector<1x8x16xf32> to vector<8x16xf32>
    %227 = vector.shape_cast %224 : vector<8x16xf32> to vector<1x8x16xf32>
    tpu.vector_store %arg6[%c1_199, %c0_200, %c128_201], %227 {strides = array<i32>} : memref<2x8x256xf32, #tpu.memory_space<vmem>>, vector<1x8x16xf32>,
    %c0_202 = arith.constant 0 : index
    %c486 = arith.constant 486 : index
    %228 = vector.load %arg9[%c0_202, %c486] : memref<8x610xf32, #tpu.memory_space<vmem>>, vector<8x16xf32>
    %c1_203 = arith.constant 1 : index
    %c0_204 = arith.constant 0 : index
    %c144_205 = arith.constant 144 : index
    %229 = vector.load %arg6[%c1_203, %c0_204, %c144_205] : memref<2x8x256xf32, #tpu.memory_space<vmem>>, vector<1x8x16xf32>
    %230 = vector.shape_cast %229 : vector<1x8x16xf32> to vector<8x16xf32>
    %231 = vector.shape_cast %228 : vector<8x16xf32> to vector<1x8x16xf32>
    tpu.vector_store %arg6[%c1_203, %c0_204, %c144_205], %231 {strides = array<i32>} : memref<2x8x256xf32, #tpu.memory_space<vmem>>, vector<1x8x16xf32>,
    %c0_206 = arith.constant 0 : index
    %c504 = arith.constant 504 : index
    %232 = vector.load %arg9[%c0_206, %c504] : memref<8x610xf32, #tpu.memory_space<vmem>>, vector<8x16xf32>
    %c1_207 = arith.constant 1 : index
    %c0_208 = arith.constant 0 : index
    %c160_209 = arith.constant 160 : index
    %233 = vector.load %arg6[%c1_207, %c0_208, %c160_209] : memref<2x8x256xf32, #tpu.memory_space<vmem>>, vector<1x8x16xf32>
    %234 = vector.shape_cast %233 : vector<1x8x16xf32> to vector<8x16xf32>
    %235 = vector.shape_cast %232 : vector<8x16xf32> to vector<1x8x16xf32>
    tpu.vector_store %arg6[%c1_207, %c0_208, %c160_209], %235 {strides = array<i32>} : memref<2x8x256xf32, #tpu.memory_space<vmem>>, vector<1x8x16xf32>,
    %c0_210 = arith.constant 0 : index
    %c522 = arith.constant 522 : index
    %236 = vector.load %arg9[%c0_210, %c522] : memref<8x610xf32, #tpu.memory_space<vmem>>, vector<8x16xf32>
    %c1_211 = arith.constant 1 : index
    %c0_212 = arith.constant 0 : index
    %c176_213 = arith.constant 176 : index
    %237 = vector.load %arg6[%c1_211, %c0_212, %c176_213] : memref<2x8x256xf32, #tpu.memory_space<vmem>>, vector<1x8x16xf32>
    %238 = vector.shape_cast %237 : vector<1x8x16xf32> to vector<8x16xf32>
    %239 = vector.shape_cast %236 : vector<8x16xf32> to vector<1x8x16xf32>
    tpu.vector_store %arg6[%c1_211, %c0_212, %c176_213], %239 {strides = array<i32>} : memref<2x8x256xf32, #tpu.memory_space<vmem>>, vector<1x8x16xf32>,
    %c0_214 = arith.constant 0 : index
    %c540 = arith.constant 540 : index
    %240 = vector.load %arg9[%c0_214, %c540] : memref<8x610xf32, #tpu.memory_space<vmem>>, vector<8x16xf32>
    %c1_215 = arith.constant 1 : index
    %c0_216 = arith.constant 0 : index
    %c192_217 = arith.constant 192 : index
    %241 = vector.load %arg6[%c1_215, %c0_216, %c192_217] : memref<2x8x256xf32, #tpu.memory_space<vmem>>, vector<1x8x16xf32>
    %242 = vector.shape_cast %241 : vector<1x8x16xf32> to vector<8x16xf32>
    %243 = vector.shape_cast %240 : vector<8x16xf32> to vector<1x8x16xf32>
    tpu.vector_store %arg6[%c1_215, %c0_216, %c192_217], %243 {strides = array<i32>} : memref<2x8x256xf32, #tpu.memory_space<vmem>>, vector<1x8x16xf32>,
    %c0_218 = arith.constant 0 : index
    %c558 = arith.constant 558 : index
    %244 = vector.load %arg9[%c0_218, %c558] : memref<8x610xf32, #tpu.memory_space<vmem>>, vector<8x16xf32>
    %c1_219 = arith.constant 1 : index
    %c0_220 = arith.constant 0 : index
    %c208_221 = arith.constant 208 : index
    %245 = vector.load %arg6[%c1_219, %c0_220, %c208_221] : memref<2x8x256xf32, #tpu.memory_space<vmem>>, vector<1x8x16xf32>
    %246 = vector.shape_cast %245 : vector<1x8x16xf32> to vector<8x16xf32>
    %247 = vector.shape_cast %244 : vector<8x16xf32> to vector<1x8x16xf32>
    tpu.vector_store %arg6[%c1_219, %c0_220, %c208_221], %247 {strides = array<i32>} : memref<2x8x256xf32, #tpu.memory_space<vmem>>, vector<1x8x16xf32>,
    %c0_222 = arith.constant 0 : index
    %c576 = arith.constant 576 : index
    %248 = vector.load %arg9[%c0_222, %c576] : memref<8x610xf32, #tpu.memory_space<vmem>>, vector<8x16xf32>
    %c1_223 = arith.constant 1 : index
    %c0_224 = arith.constant 0 : index
    %c224_225 = arith.constant 224 : index
    %249 = vector.load %arg6[%c1_223, %c0_224, %c224_225] : memref<2x8x256xf32, #tpu.memory_space<vmem>>, vector<1x8x16xf32>
    %250 = vector.shape_cast %249 : vector<1x8x16xf32> to vector<8x16xf32>
    %251 = vector.shape_cast %248 : vector<8x16xf32> to vector<1x8x16xf32>
    tpu.vector_store %arg6[%c1_223, %c0_224, %c224_225], %251 {strides = array<i32>} : memref<2x8x256xf32, #tpu.memory_space<vmem>>, vector<1x8x16xf32>,
    %c0_226 = arith.constant 0 : index
    %c594 = arith.constant 594 : index
    %252 = vector.load %arg9[%c0_226, %c594] : memref<8x610xf32, #tpu.memory_space<vmem>>, vector<8x16xf32>
    %c1_227 = arith.constant 1 : index
    %c0_228 = arith.constant 0 : index
    %c240_229 = arith.constant 240 : index
    %253 = vector.load %arg6[%c1_227, %c0_228, %c240_229] : memref<2x8x256xf32, #tpu.memory_space<vmem>>, vector<1x8x16xf32>
    %254 = vector.shape_cast %253 : vector<1x8x16xf32> to vector<8x16xf32>
    %255 = vector.shape_cast %252 : vector<8x16xf32> to vector<1x8x16xf32>
    tpu.vector_store %arg6[%c1_227, %c0_228, %c240_229], %255 {strides = array<i32>} : memref<2x8x256xf32, #tpu.memory_space<vmem>>, vector<1x8x16xf32>,
    return
  }
}

</mosaic_0001>

<bundles_post_ra>
// kernel: early_exit_resnet_forward.1
= control target key start
LH: loop header
LB: loop body
LE: loop exit
PB: predicated region body
PF: predicated region fallthrough
CT: control target
= control target key end

     0   :  { %s5354_s28 = smov 127   ;;  %v5355_v4 = vmov 0.0   ;;  %s6211_s0 = inlined_call_operand.vmem [shape: f32[4,648], index: 0, kind: input, shape index: {}]   ;;  %s6212_s1 = inlined_call_operand.vmem [shape: f32[1,610], index: 1, kind: input, shape index: {}]   ;;  %s6213_s2 = inlined_call_operand.vmem [shape: f32[9,8,4], index: 2, kind: input, shape index: {}]   ;;  %s6214_s3 = inlined_call_operand.vmem [shape: f32[8,1], index: 3, kind: input, shape index: {}]   ;;  %s6215_s4 = inlined_call_operand.vmem [shape: f32[9,8,8], index: 4, kind: input, shape index: {}]   ;;  %s6216_s5 = inlined_call_operand.vmem [shape: f32[8,1], index: 5, kind: input, shape index: {}]   ;;  %s6217_s6 = inlined_call_operand.vmem [shape: f32[2,8,256], index: 6, kind: output, shape index: {0}]   ;;  %s6218_s7 = inlined_call_operand.hbm [shape: f32[1,1], index: 7, kind: output, shape index: {1}]  }
   0x1   :  { %v5438_v0 = vld [vmem:[%s6211_s0] sm:$0xff]  ;;  %v5443_v1 = vld [vmem:[%s6211_s0 + $0x8] sm:$0xff]  ;;  %132 = vmatprep.mubr.f32.mxu0 %v5355_v4  ;;  %2349 = vst [vmem:[#allocation2] sm:$0xff] %v5355_v4  ;;  %2353 = vst [vmem:[#allocation2 + $0x20] sm:$0xff] %v5355_v4  ;;  %203 = vmatprep.mubr.f32.mxu1 %v5355_v4 }
   0x2   :  { %38 = vrot.lane.b32.xlu1 %v5438_v0, %s5354_s28  ;;  %v5449_v2 = vcombine.high %v5438_v0, %v5438_v0  ;;  %v5453_v3 = vcombine.high %v5443_v1, %v5443_v1 }
   0x4   :  { %40 = vrot.lane.b32.xlu0 %v5449_v2, %s5354_s28 }
   0x6   :  { %44 = vrot.lane.b32.xlu1 %v5453_v3, %s5354_s28 }
   0x7   :  { %13 = vsyncpa [#allocation5], 0  ;;  %v5468_v5 = vld [vmem:[%s6211_s0 + $0x10] sm:$0xf]  ;;  %s5356_s8 = smov 126   ;;  %s5357_s11 = smov 110  }
   0x8   :  { %42 = vrot.lane.b32.xlu0 %v5443_v1, %s5354_s28  ;;  %v507_v6 = vld [vmem:[%s6211_s0 + $0x10] sm:$0xf]  ;;  %s5358_s14 = smov 109   ;;  %s5359_s17 = smov 108   ;;  %v5363_v12 = vmov 0   ;;  %v2302_v13 = vld [vmem:[%s6214_s3] sm:$0xff] }
   0x9   :  { %v762_v7 = vld [vmem:[%s6211_s0 + $0x10] sm:$0xf]  ;;  %s5360_s20 = smov 92   ;;  %s5361_s23 = smov 91   ;;  %5308 = vset.pattern.permute.xlu0 %v5363_v12  ;;  %5307 = vset.pattern.permute.xlu1 %v5363_v12  ;;  %vm48_vm0 = vcmask 1039360   ;;  %vm57_vm1 = vcmask 1043456  }
   0xa   :  { %517 = vrot.lane.b32.xlu1 %v5449_v2, %s5356_s8  ;;  %v1017_v8 = vld [vmem:[%s6211_s0 + $0x10] sm:$0xf]  ;;  %v4943_v19 = vld [vmem:[%s6213_s2 + $0x8] sm:$0xff]  ;;  %vm53_vm2 = vcmask 31744   ;;  %vm5364_vm3 = vmmov 0   ;;  %vm525_vm4 = vcmask 1031168  }
   0xb   :  { %v1272_v9 = vld [vmem:[%s6211_s0 + $0x10] sm:$0xf]  ;;  %v30_v28 = vld [vmem:[%s6213_s2] sm:$0xff]  ;;  %vm780_vm5 = vcmask 900096   ;;  %v4969_v44 = vld [vmem:[%s6213_s2 + $0x18] sm:$0xff]  ;;  %vm1035_vm6 = vcmask 891904  }
   0xc   :  { %46 = vrot.lane.b32.xlu0 %v5468_v5, %s5354_s28  ;;  %v1527_v10 = vld [vmem:[%s6211_s0 + $0x10] sm:$0xff]  ;;  %s5362_s0 = smov 90   ;;  %v4978_v53 = vld [vmem:[%s6213_s2 + $0x20] sm:$0xff]  ;;  %vm1290_vm7 = vcmask 883712   ;;  %v4987_v61 = vld [vmem:[%s6213_s2 + $0x28] sm:$0xff]  ;;  %vm1548_vm8 = vcmask 752640  }
   0xd   :  { %v1535_v11 = vcombine.high %v1527_v10, %v1527_v10  ;;  %v4960_v35 = vld [vmem:[%s6213_s2 + $0x10] sm:$0xff]  ;;  %vm1807_vm9 = vcmask 744448   ;;  %vm2066_vm10 = vcmask 736256   ;;  %vm2354_vm11 = vcmask 64512   ;;  %s5367_s26 = smov 122   ;;  %s5369_s27 = smov 60  }
   0xe   :  { %515 = vrot.lane.b32.xlu1 %v5438_v0, %s5356_s8  ;;  %2355 = vst.msk [vmem:[#allocation2 + $0x28] sm:$0xff] %vm2354_vm11, %v5355_v4  ;;  %vm2381_vm12 = vcmask 1047704   ;;  %vm2371_vm13 = vcmask 154624   ;;  %vm2386_vm14 = vcmask 957440   ;;  %vm4593_vm15 = vcmask 801792   ;;  %s5378_s3 = smov 38  }
   0xf   :  { %s5379_s29 = smov 52   ;;  %s5381_s30 = smov 118  }
  0x10   :  { %519 = vrot.lane.b32.xlu0 %v5443_v1, %s5356_s8  ;;  %s5382_s9 = smov 36   ;;  %s5383_s10 = smov 100  }
  0x11   :  { %s5384_s12 = smov 102   ;;  %s5385_s13 = smov 50  }
  0x12   :  { %523 = vrot.lane.b32.xlu1 %v507_v6, %s5356_s8  ;;  %v4996_v6 = vld [vmem:[%s6213_s2 + $0x30] sm:$0xff]  ;;  %s5386_s15 = smov 116   ;;  %s5387_s16 = smov 34  }
  0x13   :  { %s5388_s18 = smov 114   ;;  %s5389_s19 = smov 32  }
  0x14   :  { %521 = vrot.lane.b32.xlu0 %v5453_v3, %s5356_s8  ;;  %s5390_s21 = smov 48   ;;  %s5391_s22 = smov 46  }
  0x15   :  { %s5392_s24 = smov 98  }
  0x16   :  { %774 = vrot.lane.b32.xlu1 %v5443_v1, %s5357_s11 }
  0x18   :  { %772 = vrot.lane.b32.xlu0 %v5449_v2, %s5357_s11 }
  0x1a   :  { %776 = vrot.lane.b32.xlu1 %v5453_v3, %s5357_s11 }
  0x1c   :  { %770 = vrot.lane.b32.xlu0 %v5438_v0, %s5357_s11 }
  0x1e   :  { %1027 = vrot.lane.b32.xlu1 %v5449_v2, %s5358_s14 }
  0x20   :  { %778 = vrot.lane.b32.xlu0 %v762_v7, %s5357_s11 }
  0x22   :  { %1025 = vrot.lane.b32.xlu1 %v5438_v0, %s5358_s14 }
  0x24   :  { %1029 = vrot.lane.b32.xlu0 %v5443_v1, %s5358_s14 }
  0x26   :  { %1033 = vrot.lane.b32.xlu1 %v1017_v8, %s5358_s14 }
  0x28   :  { %1031 = vrot.lane.b32.xlu0 %v5453_v3, %s5358_s14 }
  0x2a   :  { %1284 = vrot.lane.b32.xlu1 %v5443_v1, %s5359_s17 }
  0x2c   :  { %1282 = vrot.lane.b32.xlu0 %v5449_v2, %s5359_s17 }
  0x2e   :  { %1286 = vrot.lane.b32.xlu1 %v5453_v3, %s5359_s17 }
  0x30   :  { %1280 = vrot.lane.b32.xlu0 %v5438_v0, %s5359_s17 }
  0x32   :  { %1538 = vrot.lane.b32.xlu1 %v5449_v2, %s5360_s20 }
  0x34   :  { %1288 = vrot.lane.b32.xlu0 %v1272_v9, %s5359_s17 }
  0x36   :  { %1536 = vrot.lane.b32.xlu1 %v5438_v0, %s5360_s20 }
  0x38   :  { %1540 = vrot.lane.b32.xlu0 %v5443_v1, %s5360_s20 }
  0x3a   :  { %1544 = vrot.lane.b32.xlu1 %v1527_v10, %s5360_s20 }
  0x3c   :  { %1542 = vrot.lane.b32.xlu0 %v5453_v3, %s5360_s20 }
  0x3e   :  { %1797 = vrot.lane.b32.xlu1 %v5449_v2, %s5361_s23 }
  0x40   :  { %1546 = vrot.lane.b32.xlu0 %v1535_v11, %s5360_s20 }
  0x42   :  { %1795 = vrot.lane.b32.xlu1 %v5438_v0, %s5361_s23 }
  0x44   :  { %1799 = vrot.lane.b32.xlu0 %v5443_v1, %s5361_s23 }
  0x46   :  { %1803 = vrot.lane.b32.xlu1 %v1527_v10, %s5361_s23 }
  0x48   :  { %1801 = vrot.lane.b32.xlu0 %v5453_v3, %s5361_s23 }
  0x4a   :  { %2056 = vrot.lane.b32.xlu1 %v5449_v2, %s5362_s0 }
  0x4c   :  { %1805 = vrot.lane.b32.xlu0 %v1535_v11, %s5361_s23 }
  0x4e   :  { %2054 = vrot.lane.b32.xlu1 %v5438_v0, %s5362_s0 }
  0x50   :  { %2058 = vrot.lane.b32.xlu0 %v5443_v1, %s5362_s0 }
  0x52   :  { %2062 = vrot.lane.b32.xlu1 %v1527_v10, %s5362_s0 }
  0x54   :  { %2060 = vrot.lane.b32.xlu0 %v5453_v3, %s5362_s0 }
  0x56   :  { %2305 = vperm.xlu1 %5307, %v2302_v13  }
  0x58   :  { %2064 = vrot.lane.b32.xlu0 %v1535_v11, %s5362_s0 }
  0x74   :  { %v39_v14 = vpop.permute.xlu1 %38 }
  0x76   :  { %v41_v15 = vpop.permute.xlu0 %40 }
  0x77   :  { %v49_v21 = vsel %vm48_vm0, %v39_v14, %v41_v15 }
  0x78   :  { %v45_v16 = vpop.permute.xlu1 %44 }
  0x7a   :  { %v43_v17 = vpop.permute.xlu0 %42 }
  0x7b   :  { %v50_v18 = vsel %vm48_vm0, %v41_v15, %v43_v17  ;;  %v51_v25 = vsel %vm48_vm0, %v43_v17, %v45_v16 }
  0x7c   :  { %v518_v20 = vpop.permute.xlu1 %517  ;;  %4944 = vmatprep.subr.msk.mxu0 %vm57_vm1, %v50_v18  ;;  %v5005_v18 = vld [vmem:[%s6213_s2 + $0x38] sm:$0xff] }
  0x7d   :  { %4945 = vmatpush1.msk.msra.mxu0 %vm57_vm1, %v49_v21 }
  0x7e   :  { %4946 = vmatmul.mubr.msk.f32.vlgmr.msra.gmra.mrb[0].mxu0 %vm53_vm2, %v4943_v19  ;;  %5110 = vmatprep.subr.mxu0 %v5355_v4  ;;  %v47_v22 = vpop.permute.xlu0 %46 }
  0x7f   :  { %5111 = vmatpush3.msk.msra.mxu0 %vm57_vm1, %v47_v22  ;;  %v52_v23 = vsel %vm48_vm0, %v45_v16, %v47_v22  ;;  %5112 = vmatprep.mubr.msk.f32.mxu0 %vm5364_vm3, %v5355_v4 }
  0x80   :  { %v516_v24 = vpop.permute.xlu1 %515  ;;  %4947 = vmatprep.subr.msk.mxu1 %vm57_vm1, %v52_v23  ;;  %4952 = vmatprep.subr.msk.mxu0 %vm57_vm1, %v5449_v2 }
  0x81   :  { %4948 = vmatpush1.msk.msra.mxu1 %vm57_vm1, %v51_v25  ;;  %v526_v30 = vsel %vm525_vm4, %v516_v24, %v518_v20 }
  0x82   :  { %4949 = vmatmul.mubr.msk.f32.vlgmr.msra.gmra.mrb[0].mxu1 %vm53_vm2, %v4943_v19  ;;  %5113 = vmatmul.mubr.msk.f32.vlgmr.msra.gmra.mrb[2].mxu0 %vm53_vm2, %v4943_v19  ;;  %v520_v26 = vpop.permute.xlu0 %519 }
  0x83   :  { %4953 = vmatpush1.msk.msra.mxu0 %vm57_vm1, %v5438_v0  ;;  %v527_v27 = vsel %vm525_vm4, %v518_v20, %v520_v26  ;;  %357 = vmatprep.mubr.f32.mxu0 %v5355_v4 }
  0x84   :  { %v524_v29 = vpop.permute.xlu1 %523  ;;  %4961 = vmatprep.subr.msk.mxu0 %vm57_vm1, %v527_v27  ;;  %4955 = vmatprep.subr.msk.mxu1 %vm57_vm1, %v5453_v3 }
  0x85   :  { %4956 = vmatpush1.msk.msra.mxu1 %vm57_vm1, %v5443_v1  ;;  %428 = vmatprep.mubr.f32.mxu1 %v5355_v4 }
  0x86   :  { %4954 = vmatmul.mubr.msk.f32.vlgmr.msra.gmra.mrb[0].mxu0 %vm53_vm2, %v30_v28  ;;  %v522_v31 = vpop.permute.xlu0 %521  ;;  %5115 = vmatprep.subr.mxu1 %v5355_v4 }
  0x87   :  { %4962 = vmatpush1.msk.msra.mxu0 %vm57_vm1, %v526_v30  ;;  %607 = vmatprep.mubr.f32.mxu0 %v5355_v4  ;;  %v529_v34 = vsel %vm525_vm4, %v522_v31, %v524_v29  ;;  %v528_v37 = vsel %vm525_vm4, %v520_v26, %v522_v31  ;;  %v5014_v30 = vld [vmem:[%s6213_s2 + $0x40] sm:$0xff]  ;;  %s5368_s2 = smov 112  }
  0x88   :  { %v775_v32 = vpop.permute.xlu1 %774  ;;  %5120 = vmatprep.subr.mxu0 %v5355_v4 }
  0x8a   :  { %4957 = vmatmul.mubr.msk.f32.vlgmr.msra.gmra.mrb[0].mxu1 %vm53_vm2, %v30_v28  ;;  %v773_v33 = vpop.permute.xlu0 %772 }
  0x8b   :  { %5116 = vmatpush3.msk.msra.mxu1 %vm57_vm1, %v5468_v5  ;;  %5117 = vmatprep.mubr.msk.f32.mxu1 %vm5364_vm3, %v5355_v4  ;;  %v782_v39 = vsel %vm780_vm5, %v773_v33, %v775_v32 }
  0x8c   :  { %4964 = vmatprep.subr.msk.mxu1 %vm57_vm1, %v529_v34  ;;  %v777_v36 = vpop.permute.xlu1 %776 }
  0x8d   :  { %v783_v45 = vsel %vm780_vm5, %v775_v32, %v777_v36 }
  0x8e   :  { %5118 = vmatmul.mubr.msk.f32.vlgmr.msra.gmra.mrb[2].mxu1 %vm53_vm2, %v30_v28  ;;  %4963 = vmatmul.mubr.msk.f32.vlgmr.msra.gmra.mrb[0].mxu0 %vm53_vm2, %v4960_v35  ;;  %v771_v38 = vpop.permute.xlu0 %770 }
  0x8f   :  { %4965 = vmatpush1.msk.msra.mxu1 %vm57_vm1, %v528_v37  ;;  %5121 = vmatpush3.msk.msra.mxu0 %vm57_vm1, %v524_v29  ;;  %v781_v41 = vsel %vm780_vm5, %v771_v38, %v773_v33 }
  0x90   :  { %4970 = vmatprep.subr.msk.mxu0 %vm57_vm1, %v782_v39  ;;  %v1028_v40 = vpop.permute.xlu1 %1027  ;;  %678 = vmatprep.mubr.f32.mxu1 %v5355_v4 }
  0x91   :  { %5122 = vmatprep.mubr.msk.f32.mxu0 %vm5364_vm3, %v5355_v4 }
  0x92   :  { %4966 = vmatmul.mubr.msk.f32.vlgmr.msra.gmra.mrb[0].mxu1 %vm53_vm2, %v4960_v35  ;;  %5123 = vmatmul.mubr.msk.f32.vlgmr.msra.gmra.mrb[4].mxu0 %vm53_vm2, %v4960_v35  ;;  %v779_v42 = vpop.permute.xlu0 %778 }
  0x93   :  { %4971 = vmatpush1.msk.msra.mxu0 %vm57_vm1, %v781_v41  ;;  %v784_v43 = vsel %vm780_vm5, %v777_v36, %v779_v42  ;;  %862 = vmatprep.mubr.f32.mxu0 %v5355_v4 }
  0x94   :  { %v1026_v46 = vpop.permute.xlu1 %1025  ;;  %4973 = vmatprep.subr.msk.mxu1 %vm57_vm1, %v784_v43  ;;  %933 = vmatprep.mubr.f32.mxu1 %v5355_v4 }
  0x95   :  { %4974 = vmatpush1.msk.msra.mxu1 %vm57_vm1, %v783_v45  ;;  %v1036_v49 = vsel %vm1035_vm6, %v1026_v46, %v1028_v40 }
  0x96   :  { %4972 = vmatmul.mubr.msk.f32.vlgmr.msra.gmra.mrb[0].mxu0 %vm53_vm2, %v4969_v44  ;;  %v1030_v47 = vpop.permute.xlu0 %1029  ;;  %5125 = vmatprep.subr.mxu1 %v5355_v4 }
  0x97   :  { %v1037_v48 = vsel %vm1035_vm6, %v1028_v40, %v1030_v47  ;;  %1117 = vmatprep.mubr.f32.mxu0 %v5355_v4 }
  0x98   :  { %v1034_v50 = vpop.permute.xlu1 %1033  ;;  %4979 = vmatprep.subr.msk.mxu0 %vm57_vm1, %v1037_v48 }
  0x99   :  { %4980 = vmatpush1.msk.msra.mxu0 %vm57_vm1, %v1036_v49 }
  0x9a   :  { %4975 = vmatmul.mubr.msk.f32.vlgmr.msra.gmra.mrb[0].mxu1 %vm53_vm2, %v4969_v44  ;;  %v1032_v51 = vpop.permute.xlu0 %1031  ;;  %5130 = vmatprep.subr.mxu0 %v5355_v4 }
  0x9b   :  { %5126 = vmatpush3.msk.msra.mxu1 %vm57_vm1, %v779_v42  ;;  %v1039_v52 = vsel %vm1035_vm6, %v1032_v51, %v1034_v50  ;;  %5127 = vmatprep.mubr.msk.f32.mxu1 %vm5364_vm3, %v5355_v4  ;;  %v1038_v55 = vsel %vm1035_vm6, %v1030_v47, %v1032_v51 }
  0x9c   :  { %v1285_v54 = vpop.permute.xlu1 %1284  ;;  %4982 = vmatprep.subr.msk.mxu1 %vm57_vm1, %v1039_v52 }
  0x9e   :  { %5128 = vmatmul.mubr.msk.f32.vlgmr.msra.gmra.mrb[4].mxu1 %vm53_vm2, %v4969_v44  ;;  %4981 = vmatmul.mubr.msk.f32.vlgmr.msra.gmra.mrb[0].mxu0 %vm53_vm2, %v4978_v53  ;;  %v1283_v56 = vpop.permute.xlu0 %1282 }
  0x9f   :  { %4983 = vmatpush1.msk.msra.mxu1 %vm57_vm1, %v1038_v55  ;;  %5131 = vmatpush3.msk.msra.mxu0 %vm57_vm1, %v1034_v50  ;;  %v1292_v57 = vsel %vm1290_vm7, %v1283_v56, %v1285_v54 }
  0xa0   :  { %v1287_v58 = vpop.permute.xlu1 %1286  ;;  %4988 = vmatprep.subr.msk.mxu0 %vm57_vm1, %v1292_v57  ;;  %1188 = vmatprep.mubr.f32.mxu1 %v5355_v4 }
  0xa1   :  { %5132 = vmatprep.mubr.msk.f32.mxu0 %vm5364_vm3, %v5355_v4  ;;  %v1293_v1 = vsel %vm1290_vm7, %v1285_v54, %v1287_v58 }
  0xa2   :  { %4984 = vmatmul.mubr.msk.f32.vlgmr.msra.gmra.mrb[0].mxu1 %vm53_vm2, %v4978_v53  ;;  %5133 = vmatmul.mubr.msk.f32.vlgmr.msra.gmra.mrb[6].mxu0 %vm53_vm2, %v4978_v53  ;;  %v1281_v59 = vpop.permute.xlu0 %1280 }
  0xa3   :  { %v1291_v60 = vsel %vm1290_vm7, %v1281_v59, %v1283_v56  ;;  %1372 = vmatprep.mubr.f32.mxu0 %v5355_v4  ;;  %1443 = vmatprep.mubr.f32.mxu1 %v5355_v4 }
  0xa4   :  { %v1539_v62 = vpop.permute.xlu1 %1538  ;;  %4989 = vmatpush1.msk.msra.mxu0 %vm57_vm1, %v1291_v60 }
  0xa6   :  { %v1289_v63 = vpop.permute.xlu0 %1288  ;;  %4990 = vmatmul.mubr.msk.f32.vlgmr.msra.gmra.mrb[0].mxu0 %vm53_vm2, %v4987_v61 }
  0xa7   :  { %v1294_v0 = vsel %vm1290_vm7, %v1287_v58, %v1289_v63  ;;  %1631 = vmatprep.mubr.f32.mxu0 %v5355_v4  ;;  %v2319_v58 = vlaneseq }
  0xa8   :  { %v1537_v2 = vpop.permute.xlu1 %1536  ;;  %4991 = vmatprep.subr.msk.mxu1 %vm57_vm1, %v1294_v0 }
  0xa9   :  { %4992 = vmatpush1.msk.msra.mxu1 %vm57_vm1, %v1293_v1  ;;  %v1549_v7 = vsel %vm1548_vm8, %v1537_v2, %v1539_v62  ;;  %v2320_v59 = vshrl.u32 %v2319_v58, 7  ;;  %v26_v1 = vld [vmem:[%s6212_s1] sm:$0x1f]  ;;  %s5365_s1 = smov 19  }
  0xaa   :  { %4993 = vmatmul.mubr.msk.f32.vlgmr.msra.gmra.mrb[0].mxu1 %vm53_vm2, %v4987_v61  ;;  %5135 = vmatprep.subr.mxu1 %v5355_v4  ;;  %v1541_v3 = vpop.permute.xlu0 %1540 }
  0xab   :  { %5136 = vmatpush3.msk.msra.mxu1 %vm57_vm1, %v1289_v63  ;;  %v1550_v5 = vsel %vm1548_vm8, %v1539_v62, %v1541_v3  ;;  %5137 = vmatprep.mubr.msk.f32.mxu1 %vm5364_vm3, %v5355_v4  ;;  %v2321_v62 = vsub.s32 0, %v2320_v59  ;;  %v2325_v2 = vsub.s32 1, %v2320_v59 }
  0xac   :  { %v1545_v8 = vpop.permute.xlu1 %1544  ;;  %4997 = vmatprep.subr.msk.mxu0 %vm57_vm1, %v1550_v5 }
  0xad   :  { %4998 = vmatpush1.msk.msra.mxu0 %vm57_vm1, %v1549_v7 }
  0xae   :  { %5138 = vmatmul.mubr.msk.f32.vlgmr.msra.gmra.mrb[6].mxu1 %vm53_vm2, %v4987_v61  ;;  %v1543_v9 = vpop.permute.xlu0 %1542  ;;  %4999 = vmatmul.mubr.msk.f32.vlgmr.msra.gmra.mrb[0].mxu0 %vm53_vm2, %v4996_v6 }
  0xaf   :  { %v1551_v10 = vsel %vm1548_vm8, %v1541_v3, %v1543_v9  ;;  %v1552_v11 = vsel %vm1548_vm8, %v1543_v9, %v1545_v8  ;;  %5140 = vmatprep.subr.mxu0 %v5355_v4  ;;  %5142 = vmatprep.mubr.msk.f32.mxu0 %vm5364_vm3, %v5355_v4 }
  0xb0   :  { %v1798_v12 = vpop.permute.xlu1 %1797  ;;  %5000 = vmatprep.subr.msk.mxu1 %vm57_vm1, %v1552_v11  ;;  %1702 = vmatprep.mubr.f32.mxu1 %v5355_v4  ;;  %v2333_v11 = vsub.s32 3, %v2320_v59 }
  0xb1   :  { %5001 = vmatpush1.msk.msra.mxu1 %vm57_vm1, %v1551_v10  ;;  %v5745_v10 = vrot.slane %v26_v1, %v2325_v2 }
  0xb2   :  { %v1547_v13 = vpop.permute.xlu0 %1546  ;;  %5002 = vmatmul.mubr.msk.f32.vlgmr.msra.gmra.mrb[0].mxu1 %vm53_vm2, %v4996_v6 }
  0xb3   :  { %v1553_v14 = vsel %vm1548_vm8, %v1545_v8, %v1547_v13  ;;  %1961 = vmatprep.mubr.f32.mxu1 %v5355_v4  ;;  %v2329_v8 = vsub.s32 2, %v2320_v59 }
  0xb4   :  { %v1796_v15 = vpop.permute.xlu1 %1795  ;;  %5141 = vmatpush3.msk.msra.mxu0 %vm57_vm1, %v1553_v14 }
  0xb5   :  { %5143 = vmatmul.mubr.msk.f32.vlgmr.msra.gmra.mrb[8].mxu0 %vm53_vm2, %v4996_v6  ;;  %v1808_v19 = vsel %vm1807_vm9, %v1796_v15, %v1798_v12  ;;  %v5743_v6 = vrot.slane %v26_v1, %v2321_v62 }
  0xb6   :  { %v1800_v16 = vpop.permute.xlu0 %1799  ;;  %1890 = vmatprep.mubr.f32.mxu0 %v5355_v4 }
  0xb7   :  { %v1809_v17 = vsel %vm1807_vm9, %v1798_v12, %v1800_v16 }
  0xb8   :  { %v1804_v20 = vpop.permute.xlu1 %1803  ;;  %5006 = vmatprep.subr.msk.mxu0 %vm57_vm1, %v1809_v17  ;;  %v5748_v17 = vrot.slane %v26_v1, %v2329_v8 }
  0xb9   :  { %5007 = vmatpush1.msk.msra.mxu0 %vm57_vm1, %v1808_v19 }
  0xba   :  { %v1802_v21 = vpop.permute.xlu0 %1801  ;;  %5008 = vmatmul.mubr.msk.f32.vlgmr.msra.gmra.mrb[0].mxu0 %vm53_vm2, %v5005_v18 }
  0xbb   :  { %v1810_v22 = vsel %vm1807_vm9, %v1800_v16, %v1802_v21  ;;  %v1811_v23 = vsel %vm1807_vm9, %v1802_v21, %v1804_v20  ;;  %2149 = vmatprep.mubr.f32.mxu0 %v5355_v4  ;;  %v5751_v21 = vrot.slane %v26_v1, %v2333_v11 }
  0xbc   :  { %v2057_v24 = vpop.permute.xlu1 %2056  ;;  %5009 = vmatprep.subr.msk.mxu1 %vm57_vm1, %v1811_v23 }
  0xbd   :  { %5010 = vmatpush1.msk.msra.mxu1 %vm57_vm1, %v1810_v22  ;;  %v2337_v22 = vsub.s32 4, %v2320_v59 }
  0xbe   :  { %5011 = vmatmul.mubr.msk.f32.vlgmr.msra.gmra.mrb[0].mxu1 %vm53_vm2, %v5005_v18  ;;  %v1806_v25 = vpop.permute.xlu0 %1805  ;;  %5145 = vmatprep.subr.mxu1 %v5355_v4 }
  0xbf   :  { %v1812_v26 = vsel %vm1807_vm9, %v1804_v20, %v1806_v25  ;;  %5147 = vmatprep.mubr.msk.f32.mxu1 %vm5364_vm3, %v5355_v4 }
  0xc0   :  { %v2055_v27 = vpop.permute.xlu1 %2054  ;;  %5146 = vmatpush3.msk.msra.mxu1 %vm57_vm1, %v1812_v26 }
  0xc1   :  { %v2067_v31 = vsel %vm2066_vm10, %v2055_v27, %v2057_v24 }
  0xc2   :  { %5148 = vmatmul.mubr.msk.f32.vlgmr.msra.gmra.mrb[8].mxu1 %vm53_vm2, %v5005_v18  ;;  %v2059_v28 = vpop.permute.xlu0 %2058 }
  0xc3   :  { %v2068_v29 = vsel %vm2066_vm10, %v2057_v24, %v2059_v28  ;;  %2220 = vmatprep.mubr.f32.mxu1 %v5355_v4 }
  0xc4   :  { %5015 = vmatprep.subr.msk.mxu0 %vm57_vm1, %v2068_v29  ;;  %v2063_v32 = vpop.permute.xlu1 %2062 }
  0xc5   :  { %5016 = vmatpush1.msk.msra.mxu0 %vm57_vm1, %v2067_v31  ;;  %v5755_v31 = vrot.slane %v26_v1, %v2337_v22 }
  0xc6   :  { %5017 = vmatmul.mubr.msk.f32.vlgmr.msra.gmra.mrb[0].mxu0 %vm53_vm2, %v5014_v30  ;;  %v2061_v33 = vpop.permute.xlu0 %2060  ;;  %5150 = vmatprep.subr.mxu0 %v5355_v4 }
  0xc7   :  { %v2069_v34 = vsel %vm2066_vm10, %v2059_v28, %v2061_v33  ;;  %v2070_v35 = vsel %vm2066_vm10, %v2061_v33, %v2063_v32  ;;  %5152 = vmatprep.mubr.msk.f32.mxu0 %vm5364_vm3, %v5355_v4 }
  0xc8   :  { %5018 = vmatprep.subr.msk.mxu1 %vm57_vm1, %v2070_v35 }
  0xc9   :  { %5019 = vmatpush1.msk.msra.mxu1 %vm57_vm1, %v2069_v34 }
  0xca   :  { %5020 = vmatmul.mubr.msk.f32.vlgmr.msra.gmra.mrb[0].mxu1 %vm53_vm2, %v5014_v30  ;;  %v2065_v36 = vpop.permute.xlu0 %2064 }
  0xcb   :  { %v2071_v37 = vsel %vm2066_vm10, %v2063_v32, %v2065_v36  ;;  %2487 = vmatprep.mubr.f32.mxu1 %v5355_v4 }
  0xcc   :  { %5151 = vmatpush3.msk.msra.mxu0 %vm57_vm1, %v2071_v37  ;;  %vm4713_vm1 = vcmask 261248  }
  0xcd   :  { %5153 = vmatmul.mubr.msk.f32.vlgmr.msra.gmra.mrb[10].mxu0 %vm53_vm2, %v5014_v30  ;;  %vm4720_vm2 = vcmask 392448  }
  0xce   :  { %2558 = vmatprep.mubr.f32.mxu0 %v5355_v4 }
  0xd5   :  { %v2306_v0 = vpop.permute.xlu1 %2305 }
 0x155   :  { %v276_v38 = vpop.f32.mrb[2].mxu0 }
 0x156   :  { %v5114_v39 = vpop.f32.mrb[3].mxu0 }
 0x161   :  { %v501_v40 = vpop.f32.mrb[2].mxu1 }
 0x162   :  { %v502_v41 = vadd.f32 %v501_v40, %v276_v38  ;;  %v5119_v42 = vpop.f32.mrb[3].mxu1 }
 0x165   :  { %v751_v43 = vpop.f32.mrb[4].mxu0 }
 0x166   :  { %v759_v44 = vadd.f32 %v751_v43, %v502_v41  ;;  %v5124_v45 = vpop.f32.mrb[5].mxu0 }
 0x167   :  { %v3819_v45 = vld [vmem:[#allocation2 + $0x28] sm:$0xff] }
 0x171   :  { %v1006_v46 = vpop.f32.mrb[4].mxu1 }
 0x172   :  { %v1014_v47 = vadd.f32 %v1006_v46, %v759_v44  ;;  %v5129_v48 = vpop.f32.mrb[5].mxu1  ;;  %v4558_v46 = vld [vmem:[%s6216_s5] sm:$0xff]  ;;  %s5375_s5 = smov 56  }
 0x175   :  { %v1261_v49 = vpop.f32.mrb[6].mxu0 }
 0x176   :  { %v1269_v50 = vadd.f32 %v1261_v49, %v1014_v47  ;;  %v5134_v51 = vpop.f32.mrb[7].mxu0 }
 0x181   :  { %v1516_v52 = vpop.f32.mrb[6].mxu1 }
 0x182   :  { %v1524_v53 = vadd.f32 %v1516_v52, %v1269_v50  ;;  %v5139_v54 = vpop.f32.mrb[7].mxu1 }
 0x188   :  { %v1775_v55 = vpop.f32.mrb[8].mxu0 }
 0x189   :  { %v1783_v56 = vadd.f32 %v1775_v55, %v1524_v53  ;;  %v5144_v57 = vpop.f32.mrb[9].mxu0  ;;  %v5023_v53 = vld [vmem:[%s6215_s4 + $0x8] sm:$0xff] }
 0x195   :  { %v2034_v60 = vpop.f32.mrb[8].mxu1 }
 0x196   :  { %v2042_v61 = vadd.f32 %v2034_v60, %v1783_v56  ;;  %v5149_v63 = vpop.f32.mrb[9].mxu1 }
 0x199   :  { %v2151_v3 = vpop.f32.mrb[0].mxu0 }
 0x19a   :  { %v2308_v5 = vadd.f32 %v2306_v0, %v2151_v3  ;;  %v2153_v7 = vpop.f32.mrb[1].mxu0  ;;  %v2393_v3 = vld [vmem:[%s6215_s4] sm:$0xff] }
 0x19b   :  { %v2309_v9 = vadd.f32 %v2306_v0, %v2153_v7 }
 0x19c   :  { %v2313_v12 = vmax.f32 %v2308_v5, 0.0 }
 0x19d   :  { %v2314_v13 = vmax.f32 %v2309_v9, 0.0  ;;  %v2222_v14 = vpop.f32.mrb[0].mxu1 }
 0x19e   :  { %v2344_v15 = vmul.f32 %v5743_v6, %v2313_v12  ;;  %v2310_v16 = vadd.f32 %v2306_v0, %v2222_v14  ;;  %v2224_v18 = vpop.f32.mrb[1].mxu1  ;;  %v5030_v12 = vld [vmem:[%s6215_s4 + $0x10] sm:$0xff] }
 0x19f   :  { %v2345_v19 = vmul.f32 %v5745_v10, %v2314_v13  ;;  %v2311_v20 = vadd.f32 %v2306_v0, %v2224_v18 }
 0x1a0   :  { %v2315_v23 = vmax.f32 %v2310_v16, 0.0  ;;  %v2293_v24 = vpop.f32.mrb[10].mxu0  ;;  %2361 = vrot.lane.b32.xlu0 %v2344_v15, %s5365_s1 }
 0x1a1   :  { %v2316_v25 = vmax.f32 %v2311_v20, 0.0  ;;  %v2301_v26 = vadd.f32 %v2293_v24, %v2042_v61  ;;  %2363 = vrot.lane.b32.xlu1 %v2345_v19, %s5365_s1  ;;  %v5154_v27 = vpop.f32.mrb[11].mxu0  ;;  %v5034_v24 = vld [vmem:[%s6215_s4 + $0x18] sm:$0xff] }
 0x1a2   :  { %v2346_v28 = vmul.f32 %v5748_v17, %v2315_v23 }
 0x1a3   :  { %v2347_v29 = vmul.f32 %v5751_v21, %v2316_v25  ;;  %v2312_v30 = vadd.f32 %v2306_v0, %v2301_v26 }
 0x1a4   :  { %2365 = vrot.lane.b32.xlu0 %v2346_v28, %s5365_s1 }
 0x1a5   :  { %v2317_v32 = vmax.f32 %v2312_v30, 0.0  ;;  %2367 = vrot.lane.b32.xlu1 %v2347_v29, %s5365_s1 }
 0x1a7   :  { %v2348_v33 = vmul.f32 %v5755_v31, %v2317_v32 }
 0x1a9   :  { %2369 = vrot.lane.b32.xlu0 %v2348_v33, %s5365_s1  ;;  %v5038_v33 = vld [vmem:[%s6215_s4 + $0x20] sm:$0xff]  ;;  %s5370_s1 = smov 44  }
 0x212   :  { %v2362_v34 = vpop.permute.xlu0 %2361 }
 0x213   :  { %2382 = vst.msk [vmem:[#allocation2] sm:$0xff] %vm2381_vm12, %v2362_v34  ;;  %v2364_v35 = vpop.permute.xlu1 %2363 }
 0x214   :  { %v5760_v36 = vsel %vm2371_vm13, %v2362_v34, %v2364_v35 }
 0x216   :  { %v2366_v37 = vpop.permute.xlu0 %2365 }
 0x217   :  { %v5762_v38 = vsel %vm2371_vm13, %v2364_v35, %v2366_v37  ;;  %v2368_v39 = vpop.permute.xlu1 %2367 }
 0x218   :  { %v5764_v40 = vsel %vm2371_vm13, %v2366_v37, %v2368_v39 }
 0x21a   :  { %v5766_v41 = vld [vmem:[#allocation2] sm:$0xff] }
 0x21b   :  { %2852 = vrot.lane.b32.xlu0 %v5766_v41, %s5356_s8  ;;  %2401 = vrot.lane.b32.xlu1 %v5766_v41, %s5354_s28  ;;  %v2370_v42 = vpop.permute.xlu0 %2369 }
 0x21c   :  { %v2375_v43 = vsel %vm2371_vm13, %v2368_v39, %v2370_v42 }
 0x21d   :  { %2387 = vst.msk [vmem:[#allocation2 + $0x20] sm:$0xff] %vm2386_vm14, %v2375_v43  ;;  %v5042_v43 = vld [vmem:[%s6215_s4 + $0x28] sm:$0xff] }
 0x21f   :  { %2403 = vrot.lane.b32.xlu1 %v5760_v36, %s5354_s28  ;;  %2405 = vrot.lane.b32.xlu0 %v5762_v38, %s5354_s28 }
 0x223   :  { %2856 = vrot.lane.b32.xlu1 %v5762_v38, %s5356_s8  ;;  %2407 = vrot.lane.b32.xlu0 %v5764_v40, %s5354_s28 }
 0x224   :  { %v5788_v44 = vld [vmem:[#allocation2 + $0x20] sm:$0xff] }
 0x227   :  { %2858 = vrot.lane.b32.xlu1 %v5764_v40, %s5356_s8  ;;  %2854 = vrot.lane.b32.xlu0 %v5760_v36, %s5356_s8 }
 0x22b   :  { %3095 = vrot.lane.b32.xlu1 %v5760_v36, %s5357_s11  ;;  %3097 = vrot.lane.b32.xlu0 %v5762_v38, %s5357_s11 }
 0x22f   :  { %2409 = vrot.lane.b32.xlu1 %v5788_v44, %s5354_s28  ;;  %3099 = vrot.lane.b32.xlu0 %v5764_v40, %s5357_s11  ;;  %s5371_s28 = smov 58  }
 0x233   :  { %3093 = vrot.lane.b32.xlu1 %v5766_v41, %s5357_s11  ;;  %3336 = vrot.lane.b32.xlu0 %v5760_v36, %s5358_s14 }
 0x237   :  { %3338 = vrot.lane.b32.xlu1 %v5762_v38, %s5358_s14  ;;  %3334 = vrot.lane.b32.xlu0 %v5766_v41, %s5358_s14 }
 0x23b   :  { %3340 = vrot.lane.b32.xlu1 %v5764_v40, %s5358_s14  ;;  %2860 = vrot.lane.b32.xlu0 %v5788_v44, %s5356_s8 }
 0x23f   :  { %3577 = vrot.lane.b32.xlu1 %v5760_v36, %s5359_s17  ;;  %3579 = vrot.lane.b32.xlu0 %v5762_v38, %s5359_s17 }
 0x243   :  { %3575 = vrot.lane.b32.xlu1 %v5766_v41, %s5359_s17  ;;  %3581 = vrot.lane.b32.xlu0 %v5764_v40, %s5359_s17 }
 0x247   :  { %3101 = vrot.lane.b32.xlu1 %v5788_v44, %s5357_s11  ;;  %3830 = vrot.lane.b32.xlu0 %v5760_v36, %s5360_s20 }
 0x24b   :  { %3832 = vrot.lane.b32.xlu1 %v5762_v38, %s5360_s20  ;;  %3342 = vrot.lane.b32.xlu0 %v5788_v44, %s5358_s14  ;;  %s5372_s14 = smov 40  }
 0x24f   :  { %3834 = vrot.lane.b32.xlu1 %v5764_v40, %s5360_s20  ;;  %3828 = vrot.lane.b32.xlu0 %v5766_v41, %s5360_s20 }
 0x253   :  { %3838 = vrot.lane.b32.xlu1 %v3819_v45, %s5360_s20  ;;  %4074 = vrot.lane.b32.xlu0 %v5760_v36, %s5361_s23 }
 0x257   :  { %3583 = vrot.lane.b32.xlu1 %v5788_v44, %s5359_s17  ;;  %4072 = vrot.lane.b32.xlu0 %v5766_v41, %s5361_s23 }
 0x25b   :  { %4076 = vrot.lane.b32.xlu1 %v5762_v38, %s5361_s23  ;;  %3836 = vrot.lane.b32.xlu0 %v5788_v44, %s5360_s20  ;;  %s5373_s20 = smov 42  }
 0x25f   :  { %4078 = vrot.lane.b32.xlu1 %v5764_v40, %s5361_s23  ;;  %4320 = vrot.lane.b32.xlu0 %v5762_v38, %s5362_s0 }
 0x263   :  { %4318 = vrot.lane.b32.xlu1 %v5760_v36, %s5362_s0  ;;  %4080 = vrot.lane.b32.xlu0 %v5788_v44, %s5361_s23 }
 0x267   :  { %4316 = vrot.lane.b32.xlu1 %v5766_v41, %s5362_s0  ;;  %4082 = vrot.lane.b32.xlu0 %v3819_v45, %s5361_s23  ;;  %s5374_s23 = smov 54  }
 0x26b   :  { %4322 = vrot.lane.b32.xlu1 %v5764_v40, %s5362_s0  ;;  %4324 = vrot.lane.b32.xlu0 %v5788_v44, %s5362_s0 }
 0x26f   :  { %4326 = vrot.lane.b32.xlu1 %v3819_v45, %s5362_s0  ;;  %4561 = vperm.xlu0 %5308, %v4558_v46   ;;  %s5377_s0 = smov 120  }
 0x28d   :  { %v2402_v47 = vpop.permute.xlu1 %2401  ;;  %v2853_v48 = vpop.permute.xlu0 %2852 }
 0x291   :  { %v2404_v49 = vpop.permute.xlu1 %2403  ;;  %v2406_v50 = vpop.permute.xlu0 %2405 }
 0x292   :  { %v2411_v51 = vsel %vm48_vm0, %v2402_v47, %v2404_v49  ;;  %v2412_v52 = vsel %vm48_vm0, %v2404_v49, %v2406_v50 }
 0x293   :  { %2423 = vmatprep.subr.mxu1 %v2412_v52 }
 0x294   :  { %2424 = vmatpush1.msra.mxu1 %v2411_v51  ;;  %v5046_v51 = vld [vmem:[%s6215_s4 + $0x30] sm:$0xff] }
 0x295   :  { %v2857_v54 = vpop.permute.xlu1 %2856  ;;  %v2408_v55 = vpop.permute.xlu0 %2407  ;;  %5024 = vmatmul.mubr.msk.f32.vlgmr.msra.gmra.mrb[10].mxu1 %vm2354_vm11, %v5023_v53  ;;  %5155 = vmatprep.subr.mxu1 %v5355_v4 }
 0x296   :  { %5157 = vmatprep.mubr.msk.f32.mxu1 %vm5364_vm3, %v5355_v4  ;;  %v2413_v63 = vsel %vm48_vm0, %v2406_v50, %v2408_v55 }
 0x299   :  { %v2859_v56 = vpop.permute.xlu1 %2858  ;;  %v2855_v57 = vpop.permute.xlu0 %2854 }
 0x29a   :  { %v2863_v1 = vsel %vm525_vm4, %v2855_v57, %v2857_v54  ;;  %v2862_v5 = vsel %vm525_vm4, %v2853_v48, %v2855_v57  ;;  %v2864_v14 = vsel %vm525_vm4, %v2857_v54, %v2859_v56 }
 0x29d   :  { %v3096_v58 = vpop.permute.xlu1 %3095  ;;  %v5865_v59 = vpop.permute.xlu0 %3097 }
 0x29e   :  { %v3104_v15 = vsel %vm780_vm5, %v3096_v58, %v5865_v59 }
 0x2a1   :  { %v2410_v60 = vpop.permute.xlu1 %2409  ;;  %v5867_v61 = vpop.permute.xlu0 %3099 }
 0x2a2   :  { %5156 = vmatpush3.msra.mxu1 %v2410_v60  ;;  %v2414_v62 = vsel %vm48_vm0, %v2408_v55, %v2410_v60  ;;  %v3105_v29 = vsel %vm780_vm5, %v5865_v59, %v5867_v61  ;;  %vm4706_vm0 = vcmask 130048  }
 0x2a3   :  { %2494 = vmatprep.subr.mxu0 %v2414_v62  ;;  %5158 = vmatmul.mubr.msk.f32.vlgmr.msra.gmra.mrb[12].mxu1 %vm2354_vm11, %v5023_v53 }
 0x2a4   :  { %2638 = vmatprep.subr.mxu1 %v5760_v36  ;;  %2495 = vmatpush1.msra.mxu0 %v2413_v63 }
 0x2a5   :  { %2639 = vmatpush1.msra.mxu1 %v5766_v41  ;;  %v3094_v0 = vpop.permute.xlu1 %3093  ;;  %5025 = vmatmul.mubr.msk.f32.vlgmr.msra.gmra.mrb[12].mxu0 %vm2354_vm11, %v5023_v53  ;;  %v3337_v2 = vpop.permute.xlu0 %3336 }
 0x2a6   :  { %2709 = vmatprep.subr.mxu0 %v5764_v40  ;;  %2874 = vmatprep.subr.mxu1 %v2863_v1  ;;  %v3103_v19 = vsel %vm780_vm5, %v3094_v0, %v3096_v58 }
 0x2a7   :  { %2702 = vmatprep.mubr.f32.mxu1 %v5355_v4  ;;  %2710 = vmatpush1.msra.mxu0 %v5762_v38 }
 0x2a8   :  { %5027 = vmatmul.mubr.msk.f32.vlgmr.msra.gmra.mrb[10].mxu1 %vm2354_vm11, %v2393_v3  ;;  %2773 = vmatprep.mubr.f32.mxu0 %v5355_v4 }
 0x2a9   :  { %2875 = vmatpush1.msra.mxu1 %v2862_v5  ;;  %v3339_v7 = vpop.permute.xlu1 %3338  ;;  %v3335_v8 = vpop.permute.xlu0 %3334  ;;  %5160 = vmatprep.subr.mxu0 %v5355_v4 }
 0x2aa   :  { %2938 = vmatprep.mubr.f32.mxu1 %v5355_v4  ;;  %5165 = vmatprep.subr.mxu1 %v5355_v4  ;;  %v3345_v20 = vsel %vm1035_vm6, %v3337_v2, %v3339_v7  ;;  %v3344_v25 = vsel %vm1035_vm6, %v3335_v8, %v3337_v2 }
 0x2ad   :  { %v3341_v9 = vpop.permute.xlu1 %3340  ;;  %5028 = vmatmul.mubr.msk.f32.vlgmr.msra.gmra.mrb[12].mxu0 %vm2354_vm11, %v2393_v3  ;;  %v2861_v11 = vpop.permute.xlu0 %2860 }
 0x2ae   :  { %5161 = vmatpush3.msra.mxu0 %v5788_v44  ;;  %5162 = vmatprep.mubr.msk.f32.mxu0 %vm5364_vm3, %v5355_v4  ;;  %v2865_v13 = vsel %vm525_vm4, %v2859_v56, %v2861_v11  ;;  %v3346_v35 = vsel %vm1035_vm6, %v3339_v7, %v3341_v9  ;;  %vm4892_vm4 = vcmask 326656  }
 0x2af   :  { %2945 = vmatprep.subr.mxu0 %v2865_v13 }
 0x2b0   :  { %5031 = vmatmul.mubr.msk.f32.vlgmr.msra.gmra.mrb[10].mxu1 %vm2354_vm11, %v5030_v12 }
 0x2b1   :  { %5166 = vmatpush3.msra.mxu1 %v2861_v11  ;;  %v3578_v16 = vpop.permute.xlu1 %3577  ;;  %5163 = vmatmul.mubr.msk.f32.vlgmr.msra.gmra.mrb[14].mxu0 %vm2354_vm11, %v2393_v3  ;;  %v5901_v18 = vpop.permute.xlu0 %3579 }
 0x2b2   :  { %3115 = vmatprep.subr.mxu1 %v3104_v15  ;;  %2946 = vmatpush1.msra.mxu0 %v2864_v14  ;;  %v3586_v36 = vsel %vm1290_vm7, %v3578_v16, %v5901_v18 }
 0x2b3   :  { %5167 = vmatprep.mubr.msk.f32.mxu1 %vm5364_vm3, %v5355_v4  ;;  %3009 = vmatprep.mubr.f32.mxu0 %v5355_v4 }
 0x2b4   :  { %5168 = vmatmul.mubr.msk.f32.vlgmr.msra.gmra.mrb[14].mxu1 %vm2354_vm11, %v5030_v12 }
 0x2b5   :  { %3116 = vmatpush1.msra.mxu1 %v3103_v19  ;;  %v3576_v22 = vpop.permute.xlu1 %3575  ;;  %5032 = vmatmul.mubr.msk.f32.vlgmr.msra.gmra.mrb[12].mxu0 %vm2354_vm11, %v5030_v12  ;;  %v3582_v23 = vpop.permute.xlu0 %3581 }
 0x2b6   :  { %3356 = vmatprep.subr.mxu1 %v3345_v20  ;;  %3179 = vmatprep.mubr.f32.mxu1 %v5355_v4  ;;  %v3585_v39 = vsel %vm1290_vm7, %v3576_v22, %v3578_v16  ;;  %v3587_v48 = vsel %vm1290_vm7, %v5901_v18, %v3582_v23 }
 0x2b7   :  { %3250 = vmatprep.mubr.f32.mxu0 %v5355_v4 }
 0x2b8   :  { %5035 = vmatmul.mubr.msk.f32.vlgmr.msra.gmra.mrb[10].mxu1 %vm2354_vm11, %v5034_v24 }
 0x2b9   :  { %3357 = vmatpush1.msra.mxu1 %v3344_v25  ;;  %v3102_v26 = vpop.permute.xlu1 %3101  ;;  %v3831_v27 = vpop.permute.xlu0 %3830  ;;  %3420 = vmatprep.mubr.f32.mxu1 %v5355_v4 }
 0x2ba   :  { %v3106_v28 = vsel %vm780_vm5, %v5867_v61, %v3102_v26  ;;  %5175 = vmatprep.subr.mxu1 %v5355_v4  ;;  %v5050_v61 = vld [vmem:[%s6215_s4 + $0x38] sm:$0xff]  ;;  %vm4844_vm5 = vcmask 441344  }
 0x2bb   :  { %3186 = vmatprep.subr.mxu0 %v3106_v28 }
 0x2bc   :  { %3187 = vmatpush1.msra.mxu0 %v3105_v29 }
 0x2bd   :  { %v3833_v30 = vpop.permute.xlu1 %3832  ;;  %5036 = vmatmul.mubr.msk.f32.vlgmr.msra.gmra.mrb[12].mxu0 %vm2354_vm11, %v5034_v24  ;;  %5170 = vmatprep.subr.mxu0 %v5355_v4  ;;  %v3343_v32 = vpop.permute.xlu0 %3342 }
 0x2be   :  { %5171 = vmatpush3.msra.mxu0 %v3102_v26  ;;  %5172 = vmatprep.mubr.msk.f32.mxu0 %vm5364_vm3, %v5355_v4  ;;  %v3347_v34 = vsel %vm1035_vm6, %v3341_v9, %v3343_v32  ;;  %v3841_v40 = vsel %vm1548_vm8, %v3831_v27, %v3833_v30  ;;  %v5054_v9 = vld [vmem:[%s6215_s4 + $0x40] sm:$0xff]  ;;  %s5393_s4 = smov 30   ;;  %vm4734_vm6 = vcmask 654848  }
 0x2bf   :  { %3427 = vmatprep.subr.mxu0 %v3347_v34 }
 0x2c0   :  { %5039 = vmatmul.mubr.msk.f32.vlgmr.msra.gmra.mrb[10].mxu1 %vm2354_vm11, %v5038_v33 }
 0x2c1   :  { %5176 = vmatpush3.msra.mxu1 %v3343_v32  ;;  %v3835_v37 = vpop.permute.xlu1 %3834  ;;  %5173 = vmatmul.mubr.msk.f32.vlgmr.msra.gmra.mrb[16].mxu0 %vm2354_vm11, %v5034_v24  ;;  %v3829_v38 = vpop.permute.xlu0 %3828 }
 0x2c2   :  { %3597 = vmatprep.subr.mxu1 %v3586_v36  ;;  %3428 = vmatpush1.msra.mxu0 %v3346_v35  ;;  %v3840_v44 = vsel %vm1548_vm8, %v3829_v38, %v3831_v27  ;;  %v3842_v55 = vsel %vm1548_vm8, %v3833_v30, %v3835_v37 }
 0x2c3   :  { %5177 = vmatprep.mubr.msk.f32.mxu1 %vm5364_vm3, %v5355_v4  ;;  %3491 = vmatprep.mubr.f32.mxu0 %v5355_v4 }
 0x2c4   :  { %5178 = vmatmul.mubr.msk.f32.vlgmr.msra.gmra.mrb[16].mxu1 %vm2354_vm11, %v5038_v33 }
 0x2c5   :  { %3598 = vmatpush1.msra.mxu1 %v3585_v39  ;;  %v3839_v41 = vpop.permute.xlu1 %3838  ;;  %5040 = vmatmul.mubr.msk.f32.vlgmr.msra.gmra.mrb[12].mxu0 %vm2354_vm11, %v5038_v33  ;;  %v4075_v42 = vpop.permute.xlu0 %4074 }
 0x2c6   :  { %3853 = vmatprep.subr.mxu1 %v3841_v40  ;;  %3661 = vmatprep.mubr.f32.mxu1 %v5355_v4 }
 0x2c7   :  { %3732 = vmatprep.mubr.f32.mxu0 %v5355_v4 }
 0x2c8   :  { %5043 = vmatmul.mubr.msk.f32.vlgmr.msra.gmra.mrb[10].mxu1 %vm2354_vm11, %v5042_v43 }
 0x2c9   :  { %3854 = vmatpush1.msra.mxu1 %v3840_v44  ;;  %v3584_v45 = vpop.permute.xlu1 %3583  ;;  %v4073_v46 = vpop.permute.xlu0 %4072  ;;  %3917 = vmatprep.mubr.f32.mxu1 %v5355_v4 }
 0x2ca   :  { %v3588_v47 = vsel %vm1290_vm7, %v3582_v23, %v3584_v45  ;;  %5185 = vmatprep.subr.mxu1 %v5355_v4  ;;  %v4084_v58 = vsel %vm1807_vm9, %v4073_v46, %v4075_v42  ;;  %vm4741_vm7 = vcmask 786048  }
 0x2cb   :  { %3668 = vmatprep.subr.mxu0 %v3588_v47 }
 0x2cc   :  { %3669 = vmatpush1.msra.mxu0 %v3587_v48 }
 0x2cd   :  { %v4077_v49 = vpop.permute.xlu1 %4076  ;;  %5044 = vmatmul.mubr.msk.f32.vlgmr.msra.gmra.mrb[12].mxu0 %vm2354_vm11, %v5042_v43  ;;  %5180 = vmatprep.subr.mxu0 %v5355_v4  ;;  %v3837_v50 = vpop.permute.xlu0 %3836 }
 0x2ce   :  { %5181 = vmatpush3.msra.mxu0 %v3584_v45  ;;  %v3844_v52 = vsel %vm1548_vm8, %v3837_v50, %v3839_v41  ;;  %5182 = vmatprep.mubr.msk.f32.mxu0 %vm5364_vm3, %v5355_v4  ;;  %v3843_v53 = vsel %vm1548_vm8, %v3835_v37, %v3837_v50  ;;  %v4085_v54 = vsel %vm1807_vm9, %v4075_v42, %v4077_v49  ;;  %vm4807_vm8 = vcmask 818176  }
 0x2cf   :  { %3924 = vmatprep.subr.mxu0 %v3843_v53 }
 0x2d0   :  { %5047 = vmatmul.mubr.msk.f32.vlgmr.msra.gmra.mrb[10].mxu1 %vm2354_vm11, %v5046_v51 }
 0x2d1   :  { %5186 = vmatpush3.msra.mxu1 %v3844_v52  ;;  %v4079_v56 = vpop.permute.xlu1 %4078  ;;  %5183 = vmatmul.mubr.msk.f32.vlgmr.msra.gmra.mrb[18].mxu0 %vm2354_vm11, %v5042_v43  ;;  %v4321_v57 = vpop.permute.xlu0 %4320 }
 0x2d2   :  { %3925 = vmatpush1.msra.mxu0 %v3842_v55  ;;  %4097 = vmatprep.subr.mxu1 %v4085_v54  ;;  %v4086_v0 = vsel %vm1807_vm9, %v4077_v49, %v4079_v56 }
 0x2d3   :  { %5187 = vmatprep.mubr.msk.f32.mxu1 %vm5364_vm3, %v5355_v4  ;;  %3988 = vmatprep.mubr.f32.mxu0 %v5355_v4 }
 0x2d4   :  { %5188 = vmatmul.mubr.msk.f32.vlgmr.msra.gmra.mrb[18].mxu1 %vm2354_vm11, %v5046_v51 }
 0x2d5   :  { %4098 = vmatpush1.msra.mxu1 %v4084_v58  ;;  %v4319_v59 = vpop.permute.xlu1 %4318  ;;  %5048 = vmatmul.mubr.msk.f32.vlgmr.msra.gmra.mrb[12].mxu0 %vm2354_vm11, %v5046_v51  ;;  %v4081_v60 = vpop.permute.xlu0 %4080 }
 0x2d6   :  { %4161 = vmatprep.mubr.f32.mxu1 %v5355_v4  ;;  %v4329_v62 = vsel %vm2066_vm10, %v4319_v59, %v4321_v57  ;;  %v4087_v63 = vsel %vm1807_vm9, %v4079_v56, %v4081_v60  ;;  %4232 = vmatprep.mubr.f32.mxu0 %v5355_v4 }
 0x2d7   :  { %4341 = vmatprep.subr.mxu1 %v4329_v62  ;;  %4168 = vmatprep.subr.mxu0 %v4087_v63 }
 0x2d8   :  { %5051 = vmatmul.mubr.msk.f32.vlgmr.msra.gmra.mrb[10].mxu1 %vm2354_vm11, %v5050_v61  ;;  %4169 = vmatpush1.msra.mxu0 %v4086_v0 }
 0x2d9   :  { %v4317_v1 = vpop.permute.xlu1 %4316  ;;  %v4083_v2 = vpop.permute.xlu0 %4082  ;;  %5190 = vmatprep.subr.mxu0 %v5355_v4  ;;  %4405 = vmatprep.mubr.f32.mxu1 %v5355_v4 }
 0x2da   :  { %v4328_v3 = vsel %vm2066_vm10, %v4317_v1, %v4319_v59  ;;  %v4088_v5 = vsel %vm1807_vm9, %v4081_v60, %v4083_v2  ;;  %vm4748_vm9 = vcmask 917248  }
 0x2db   :  { %4342 = vmatpush1.msra.mxu1 %v4328_v3 }
 0x2dc   :  { %5195 = vmatprep.subr.mxu1 %v5355_v4 }
 0x2dd   :  { %v4323_v7 = vpop.permute.xlu1 %4322  ;;  %5052 = vmatmul.mubr.msk.f32.vlgmr.msra.gmra.mrb[12].mxu0 %vm2354_vm11, %v5050_v61  ;;  %v4325_v8 = vpop.permute.xlu0 %4324 }
 0x2de   :  { %5191 = vmatpush3.msra.mxu0 %v4088_v5  ;;  %5192 = vmatprep.mubr.msk.f32.mxu0 %vm5364_vm3, %v5355_v4  ;;  %v4331_v11 = vsel %vm2066_vm10, %v4323_v7, %v4325_v8  ;;  %v4330_v12 = vsel %vm2066_vm10, %v4321_v57, %v4323_v7 }
 0x2df   :  { %4412 = vmatprep.subr.mxu0 %v4331_v11 }
 0x2e0   :  { %5055 = vmatmul.mubr.msk.f32.vlgmr.msra.gmra.mrb[10].mxu1 %vm2354_vm11, %v5054_v9 }
 0x2e1   :  { %v4327_v13 = vpop.permute.xlu1 %4326  ;;  %5193 = vmatmul.mubr.msk.f32.vlgmr.msra.gmra.mrb[20].mxu0 %vm2354_vm11, %v5050_v61  ;;  %5197 = vmatprep.mubr.msk.f32.mxu1 %vm5364_vm3, %v5355_v4  ;;  %vm4727_vm3 = vcmask 523648  }
 0x2e2   :  { %v4332_v14 = vsel %vm2066_vm10, %v4325_v8, %v4327_v13  ;;  %4413 = vmatpush1.msra.mxu0 %v4330_v12  ;;  %4476 = vmatprep.mubr.f32.mxu0 %v5355_v4  ;;  %vm4761_vm10 = vcmask 1048448  }
 0x2e3   :  { %5196 = vmatpush3.msra.mxu1 %v4332_v14 }
 0x2e4   :  { %5198 = vmatmul.mubr.msk.f32.vlgmr.msra.gmra.mrb[20].mxu1 %vm2354_vm11, %v5054_v9 }
 0x2e5   :  { %5056 = vmatmul.mubr.msk.f32.vlgmr.msra.gmra.mrb[12].mxu0 %vm2354_vm11, %v5054_v9  ;;  %vm4758_vm11 = vcmask 932864  }
 0x2ee   :  { %v4562_v37 = vpop.permute.xlu0 %4561 }
 0x376   :  { %v2631_v15 = vpop.f32.mrb[12].mxu1 }
 0x377   :  { %v5159_v16 = vpop.f32.mrb[13].mxu1 }
 0x384   :  { %v2846_v18 = vpop.f32.mrb[14].mxu0 }
 0x385   :  { %v2847_v19 = vadd.f32 %v2846_v18, %v2631_v15  ;;  %v5164_v20 = vpop.f32.mrb[15].mxu0 }
 0x387   :  { %v3082_v22 = vpop.f32.mrb[14].mxu1 }
 0x388   :  { %v3090_v23 = vadd.f32 %v3082_v22, %v2847_v19  ;;  %v5169_v24 = vpop.f32.mrb[15].mxu1 }
 0x394   :  { %v3323_v25 = vpop.f32.mrb[16].mxu0 }
 0x395   :  { %v3331_v26 = vadd.f32 %v3323_v25, %v3090_v23  ;;  %v5174_v27 = vpop.f32.mrb[17].mxu0 }
 0x397   :  { %v3564_v28 = vpop.f32.mrb[16].mxu1 }
 0x398   :  { %v3572_v29 = vadd.f32 %v3564_v28, %v3331_v26  ;;  %v5179_v30 = vpop.f32.mrb[17].mxu1 }
 0x3a4   :  { %v3805_v4 = vpop.f32.mrb[18].mxu0 }
 0x3a5   :  { %v3813_v32 = vadd.f32 %v3805_v4, %v3572_v29  ;;  %v5184_v33 = vpop.f32.mrb[19].mxu0 }
 0x3a7   :  { %v4061_v34 = vpop.f32.mrb[18].mxu1 }
 0x3a8   :  { %v4069_v35 = vadd.f32 %v4061_v34, %v3813_v32  ;;  %v5189_v36 = vpop.f32.mrb[19].mxu1 }
 0x3b3   :  { %v4407_v38 = vpop.f32.mrb[10].mxu1 }
 0x3b4   :  { %v4564_v39 = vadd.f32 %v4562_v37, %v4407_v38  ;;  %v4409_v40 = vpop.f32.mrb[11].mxu1  ;;  %v4305_v41 = vpop.f32.mrb[20].mxu0 }
 0x3b5   :  { %v4565_v42 = vadd.f32 %v4562_v37, %v4409_v40  ;;  %v4313_v43 = vadd.f32 %v4305_v41, %v4069_v35  ;;  %v5194_v44 = vpop.f32.mrb[21].mxu0 }
 0x3b6   :  { %v4569_v45 = vrot.slane %v4564_v39, 4 }
 0x3b7   :  { %v4575_v46 = vrot.slane %v4565_v42, 4  ;;  %v4549_v47 = vpop.f32.mrb[20].mxu1 }
 0x3b8   :  { %v4570_v48 = vmax.f32 %v4564_v39, %v4569_v45  ;;  %v4557_v49 = vadd.f32 %v4549_v47, %v4313_v43  ;;  %v4478_v50 = vpop.f32.mrb[12].mxu0  ;;  %v5199_v51 = vpop.f32.mrb[21].mxu1 }
 0x3b9   :  { %v4576_v52 = vmax.f32 %v4565_v42, %v4575_v46  ;;  %v4566_v53 = vadd.f32 %v4562_v37, %v4478_v50  ;;  %v4480_v54 = vpop.f32.mrb[13].mxu0 }
 0x3ba   :  { %v4571_v55 = vrot.slane %v4570_v48, 2  ;;  %v4568_v56 = vadd.f32 %v4562_v37, %v4557_v49  ;;  %v4567_v57 = vadd.f32 %v4562_v37, %v4480_v54 }
 0x3bb   :  { %v4577_v58 = vrot.slane %v4576_v52, 2  ;;  %v4581_v59 = vrot.slane %v4566_v53, 4 }
 0x3bc   :  { %v4572_v60 = vmax.f32 %v4570_v48, %v4571_v55  ;;  %v4594_v61 = vsel %vm4593_vm15, %v4568_v56, -inf  ;;  %v4587_v62 = vrot.slane %v4567_v57, 4 }
 0x3bd   :  { %v4578_v63 = vmax.f32 %v4576_v52, %v4577_v58  ;;  %v4595_v0 = vrot.slane %v4594_v61, 4  ;;  %v4582_v1 = vmax.f32 %v4566_v53, %v4581_v59 }
 0x3be   :  { %v4573_v2 = vrot.slane %v4572_v60, 1  ;;  %v4588_v3 = vmax.f32 %v4567_v57, %v4587_v62 }
 0x3bf   :  { %v4579_v5 = vrot.slane %v4578_v63, 1  ;;  %v4596_v7 = vmax.f32 %v4594_v61, %v4595_v0  ;;  %v4583_v8 = vrot.slane %v4582_v1, 2 }
 0x3c0   :  { %v4574_v9 = vmax.f32 %v4572_v60, %v4573_v2  ;;  %v4589_v11 = vrot.slane %v4588_v3, 2 }
 0x3c1   :  { %v4580_v12 = vmax.f32 %v4578_v63, %v4579_v5  ;;  %v4597_v13 = vrot.slane %v4596_v7, 2  ;;  %v4584_v14 = vmax.f32 %v4582_v1, %v4583_v8 }
 0x3c2   :  { %v6006_v15 = vsub.f32 %v4564_v39, %v4574_v9  ;;  %v4590_v16 = vmax.f32 %v4588_v3, %v4589_v11 }
 0x3c3   :  { %v6008_v18 = vsub.f32 %v4565_v42, %v4580_v12  ;;  %v4598_v19 = vmax.f32 %v4596_v7, %v4597_v13  ;;  %v4585_v20 = vrot.slane %v4584_v14, 1 }
 0x3c4   :  { %v4606_v22 = vmul.f32 1.442695, %v6006_v15  ;;  %v4591_v23 = vrot.slane %v4590_v16, 1 }
 0x3c5   :  { %v4608_v24 = vmul.f32 1.442695, %v6008_v18  ;;  %v4599_v25 = vrot.slane %v4598_v19, 1  ;;  %v4586_v26 = vmax.f32 %v4584_v14, %v4585_v20 }
 0x3c6   :  { %5312 = vpow2.f32 %v4606_v22  ;;  %v4592_v27 = vmax.f32 %v4590_v16, %v4591_v23 }
 0x3c7   :  { %5314 = vpow2.f32 %v4608_v24  ;;  %v4600_v28 = vmax.f32 %v4598_v19, %v4599_v25  ;;  %v6012_v29 = vsub.f32 %v4566_v53, %v4586_v26 }
 0x3c8   :  { %v6014_v30 = vsub.f32 %v4567_v57, %v4592_v27 }
 0x3c9   :  { %v6016_v4 = vsub.f32 %v4568_v56, %v4600_v28  ;;  %v4610_v32 = vmul.f32 1.442695, %v6012_v29 }
 0x3ca   :  { %v4612_v33 = vmul.f32 1.442695, %v6014_v30 }
 0x3cb   :  { %v4614_v34 = vmul.f32 1.442695, %v6016_v4  ;;  %5316 = vpow2.f32 %v4610_v32 }
 0x3cc   :  { %5318 = vpow2.f32 %v4612_v33 }
 0x3cd   :  { %5320 = vpow2.f32 %v4614_v34 }
 0x3d0   :  { %v5313_v35 = vpop.eup %5312 }
 0x3d1   :  { %v5315_v36 = vpop.eup %5314  ;;  %v4616_v37 = vrot.slane %v5313_v35, 4 }
 0x3d2   :  { %v4622_v38 = vrot.slane %v5315_v36, 4 }
 0x3d3   :  { %v4617_v39 = vadd.f32 %v5313_v35, %v4616_v37 }
 0x3d4   :  { %v4623_v40 = vadd.f32 %v5315_v36, %v4622_v38 }
 0x3d5   :  { %v5317_v41 = vpop.eup %5316  ;;  %v4618_v42 = vrot.slane %v4617_v39, 2 }
 0x3d6   :  { %v5319_v43 = vpop.eup %5318  ;;  %v4624_v44 = vrot.slane %v4623_v40, 2  ;;  %v4628_v45 = vrot.slane %v5317_v41, 4 }
 0x3d7   :  { %v5321_v46 = vpop.eup %5320  ;;  %v4619_v47 = vadd.f32 %v4618_v42, %v4617_v39  ;;  %v4634_v48 = vrot.slane %v5319_v43, 4 }
 0x3d8   :  { %v4625_v49 = vadd.f32 %v4624_v44, %v4623_v40  ;;  %v4640_v50 = vsel %vm4593_vm15, %v5321_v46, 0.0  ;;  %v4629_v51 = vadd.f32 %v5317_v41, %v4628_v45 }
 0x3d9   :  { %v4620_v52 = vrot.slane %v4619_v47, 1  ;;  %v4641_v53 = vrot.slane %v4640_v50, 4  ;;  %v4635_v54 = vadd.f32 %v5319_v43, %v4634_v48 }
 0x3da   :  { %v4626_v55 = vrot.slane %v4625_v49, 1  ;;  %v4630_v56 = vrot.slane %v4629_v51, 2 }
 0x3db   :  { %v4621_v57 = vadd.f32 %v4620_v52, %v4619_v47  ;;  %v4642_v58 = vadd.f32 %v4641_v53, %v4640_v50  ;;  %v4636_v59 = vrot.slane %v4635_v54, 2 }
 0x3dc   :  { %v4627_v60 = vadd.f32 %v4626_v55, %v4625_v49  ;;  %v4631_v61 = vadd.f32 %v4630_v56, %v4629_v51 }
 0x3dd   :  { %5322 = vrcp.f32 %v4621_v57  ;;  %v4643_v62 = vrot.slane %v4642_v58, 2  ;;  %v4637_v63 = vadd.f32 %v4636_v59, %v4635_v54 }
 0x3de   :  { %5324 = vrcp.f32 %v4627_v60  ;;  %v4632_v0 = vrot.slane %v4631_v61, 1 }
 0x3df   :  { %5326 = vlog2.f32 %v4627_v60  ;;  %v4644_v1 = vadd.f32 %v4643_v62, %v4642_v58  ;;  %v4638_v2 = vrot.slane %v4637_v63, 1 }
 0x3e0   :  { %v4633_v3 = vadd.f32 %v4632_v0, %v4631_v61  ;;  %5328 = vlog2.f32 %v4621_v57 }
 0x3e1   :  { %v4645_v5 = vrot.slane %v4644_v1, 1  ;;  %v4639_v7 = vadd.f32 %v4638_v2, %v4637_v63 }
 0x3e2   :  { %5330 = vrcp.f32 %v4633_v3 }
 0x3e3   :  { %v4646_v8 = vadd.f32 %v4645_v5, %v4644_v1  ;;  %5332 = vlog2.f32 %v4633_v3 }
 0x3e4   :  { %5334 = vrcp.f32 %v4639_v7 }
 0x3e5   :  { %5336 = vrcp.f32 %v4646_v8 }
 0x3e6   :  { %5338 = vlog2.f32 %v4646_v8 }
 0x3e7   :  { %v5323_v9 = vpop.eup %5322  ;;  %5340 = vlog2.f32 %v4639_v7 }
 0x3e8   :  { %v5325_v11 = vpop.eup %5324  ;;  %v6022_v12 = vmul.f32 %v5323_v9, %v5313_v35 }
 0x3e9   :  { %v5327_v13 = vpop.eup %5326  ;;  %v6024_v14 = vmul.f32 %v5325_v11, %v5315_v36 }
 0x3ea   :  { %v5329_v16 = vpop.eup %5328  ;;  %v4660_v19 = vmul.f32 0.6931472, %v5327_v13  ;;  %4710 = vrot.lane.b32.xlu0 %v6022_v12, %s5356_s8  ;;  %4707 = vst.msk [vmem:[%s6217_s6] sm:$0xff] %vm4706_vm0, %v6022_v12  ;;  %s5366_s8 = smov 124  }
 0x3eb   :  { %v4658_v20 = vmul.f32 0.6931472, %v5329_v16 }
 0x3ec   :  { %v5331_v22 = vpop.eup %5330  ;;  %v4668_v23 = vsub.f32 %v6008_v18, %v4660_v19 }
 0x3ed   :  { %v5333_v24 = vpop.eup %5332  ;;  %v6034_v25 = vmul.f32 %v5331_v22, %v5317_v41  ;;  %v4667_v26 = vsub.f32 %v6006_v15, %v4658_v20 }
 0x3ee   :  { %v5335_v27 = vpop.eup %5334  ;;  %v4673_v28 = vmul.f32 %v4668_v23, %v6024_v14  ;;  %v4662_v32 = vmul.f32 0.6931472, %v5333_v24  ;;  %4717 = vrot.lane.b32.xlu0 %v6022_v12, %s5366_s8 }
 0x3ef   :  { %v5337_v33 = vpop.eup %5336  ;;  %v6039_v34 = vmul.f32 %v5335_v27, %v5319_v43  ;;  %v4672_v35 = vmul.f32 %v4667_v26, %v6022_v12 }
 0x3f0   :  { %v5339_v36 = vpop.eup %5338  ;;  %v4669_v18 = vsub.f32 %v6012_v29, %v4662_v32  ;;  %v4656_v37 = vmul.f32 %v5337_v33, %v5321_v46  ;;  %v4678_v38 = vmul.f32 %v4673_v28, %v5745_v10 }
 0x3f1   :  { %v5341_v39 = vpop.eup %5340  ;;  %v4666_v15 = vmul.f32 0.6931472, %v5339_v36  ;;  %v4677_v40 = vmul.f32 %v4672_v35, %v5743_v6 }
 0x3f2   :  { %v4674_v41 = vmul.f32 %v4669_v18, %v6034_v25  ;;  %v4664_v42 = vmul.f32 0.6931472, %v5341_v39  ;;  %4724 = vrot.lane.b32.xlu0 %v6022_v12, %s5367_s26  ;;  %4704 = vst.msk [vmem:[#allocation3 + $0x20] sm:$0xff] %vm4593_vm15, %v4656_v37 }
 0x3f3   :  { %v4671_v43 = vsub.f32 %v6016_v4, %v4666_v15  ;;  %v4682_v44 = vadd.f32 %v4678_v38, %v4677_v40 }
 0x3f4   :  { %v4670_v29 = vsub.f32 %v6014_v30, %v4664_v42  ;;  %v4679_v45 = vmul.f32 %v4674_v41, %v5748_v17 }
 0x3f5   :  { %v4676_v10 = vmul.f32 %v4671_v43, %v4656_v37 }
 0x3f6   :  { %v4675_v46 = vmul.f32 %v4670_v29, %v6039_v34  ;;  %v4683_v47 = vadd.f32 %v4682_v44, %v4679_v45  ;;  %4765 = vrot.lane.b32.xlu0 %v6024_v14, %s5368_s2 }
 0x3f7   :  { %v4681_v6 = vmul.f32 %v4676_v10, %v5755_v31 }
 0x3f8   :  { %v4680_v48 = vmul.f32 %v4675_v46, %v5751_v21 }
 0x3f9   :  { %v4685_v49 = vsel %vm4593_vm15, %v4681_v6, 0.0  ;;  %v4885_v17 = vld [vmem:[#allocation3 + $0x20] sm:$0xff] }
 0x3fa   :  { %v4684_v50 = vadd.f32 %v4683_v47, %v4680_v48  ;;  %4819 = vrot.lane.b32.xlu0 %v6034_v25, %s5369_s27 }
 0x3fc   :  { %v4686_v30 = vadd.f32 %v4685_v49, %v4684_v50 }
 0x3fe   :  { %4687 = vadd.xlane.f32.xlu1 %v4686_v30  ;;  %4874 = vrot.lane.b32.xlu0 %v6039_v34, %s5370_s1 }
 0x402   :  { %4771 = vrot.lane.b32.xlu0 %v6024_v14, %s5357_s11  ;;  %s5376_s11 = smov 106  }
 0x406   :  { %4826 = vrot.lane.b32.xlu0 %v6034_v25, %s5371_s28 }
 0x40a   :  { %4888 = vrot.lane.b32.xlu0 %v6039_v34, %s5372_s14 }
 0x40e   :  { %4890 = vrot.lane.b32.xlu0 %v4885_v17, %s5372_s14 }
 0x40f   :  { %4880 = vrot.lane.b32.xlu1 %v6039_v34, %s5373_s20 }
 0x412   :  { %4777 = vrot.lane.b32.xlu0 %v6024_v14, %s5359_s17  ;;  %s5380_s17 = smov 104  }
 0x413   :  { %4840 = vrot.lane.b32.xlu1 %v6034_v25, %s5374_s23 }
 0x416   :  { %4832 = vrot.lane.b32.xlu0 %v6034_v25, %s5375_s5 }
 0x417   :  { %4783 = vrot.lane.b32.xlu1 %v6024_v14, %s5376_s11 }
 0x41a   :  { %4842 = vrot.lane.b32.xlu0 %v6039_v34, %s5374_s23  ;;  %s5342_s23 = scalar_lea.hbm %s6218_s7, 16 }
 0x41b   :  { %4731 = vrot.lane.b32.xlu1 %v6022_v12, %s5377_s0  ;;  %p5343_p0 = scmp.ne.s32.totalorder %s6218_s7, %s5342_s23  ;;  %p5346_p1 = scmp.lt.u32.totalorder %s5342_s23, %s6218_s7 }
 0x41d   :  { %p5348_p2 = pnand %p5346_p1, %p5343_p0 }
 0x41e   :  { %4898 = vrot.lane.b32.xlu0 %v4885_v17, %s5378_s3 }
 0x41f   :  { %4850 = vrot.lane.b32.xlu1 %v6039_v34, %s5379_s29 }
 0x422   :  { %4789 = vrot.lane.b32.xlu0 %v6024_v14, %s5380_s17 }
 0x423   :  { %4738 = vrot.lane.b32.xlu1 %v6022_v12, %s5381_s30 }
 0x426   :  { %4904 = vrot.lane.b32.xlu0 %v4885_v17, %s5382_s9 }
 0x427   :  { %4803 = vrot.lane.b32.xlu1 %v6024_v14, %s5383_s10 }
 0x42a   :  { %4795 = vrot.lane.b32.xlu0 %v6024_v14, %s5384_s12 }
 0x42b   :  { %4856 = vrot.lane.b32.xlu1 %v6039_v34, %s5385_s13 }
 0x42e   :  { %4805 = vrot.lane.b32.xlu0 %v6034_v25, %s5383_s10 }
 0x42f   :  { %4745 = vrot.lane.b32.xlu1 %v6022_v12, %s5386_s15 }
 0x432   :  { %4910 = vrot.lane.b32.xlu0 %v4885_v17, %s5387_s16 }
 0x433   :  { %4756 = vrot.lane.b32.xlu1 %v6024_v14, %s5388_s18 }
 0x436   :  { %4754 = vrot.lane.b32.xlu0 %v6022_v12, %s5388_s18 }
 0x437   :  { %4916 = vrot.lane.b32.xlu1 %v4885_v17, %s5389_s19 }
 0x43a   :  { %4862 = vrot.lane.b32.xlu0 %v6039_v34, %s5390_s21 }
 0x43b   :  { %4868 = vrot.lane.b32.xlu1 %v6039_v34, %s5391_s22 }
 0x43e   :  { %4813 = vrot.lane.b32.xlu0 %v6034_v25, %s5392_s24 }
 0x442   :  { %4922 = vrot.lane.b32.xlu0 %v4885_v17, %s5393_s4 }
 0x45c   :  { %v4711_v21 = vpop.permute.xlu0 %4710 }
 0x45d   :  { %4714 = vst.msk [vmem:[%s6217_s6] sm:$0xff] %vm4713_vm1, %v4711_v21 }
 0x460   :  { %v4718_v31 = vpop.permute.xlu0 %4717 }
 0x461   :  { %4721 = vst.msk [vmem:[%s6217_s6] sm:$0xff] %vm4720_vm2, %v4718_v31 }
 0x464   :  { %v4725_v4 = vpop.permute.xlu0 %4724 }
 0x465   :  { %4728 = vst.msk [vmem:[%s6217_s6] sm:$0xff] %vm4727_vm3, %v4725_v4 }
 0x468   :  { %v4766_v51 = vpop.permute.xlu0 %4765 }
 0x469   :  { %4768 = vst.msk [vmem:[%s6217_s6 + $0x8] sm:$0xff] %vm4706_vm0, %v4766_v51 }
 0x46c   :  { %v4820_v52 = vpop.permute.xlu0 %4819 }
 0x46d   :  { %5058 = vst.msk [vmem:[%s6217_s6 + $0x10] sm:$0xff] %vm4706_vm0, %v4820_v52 }
 0x470   :  { %v4875_v53 = vpop.permute.xlu0 %4874 }
 0x471   :  { %5066 = vst.msk [vmem:[%s6217_s6 + $0x18] sm:$0xff] %vm4706_vm0, %v4875_v53 }
 0x474   :  { %v4772_v54 = vpop.permute.xlu0 %4771 }
 0x475   :  { %4774 = vst.msk [vmem:[%s6217_s6 + $0x8] sm:$0xff] %vm4713_vm1, %v4772_v54 }
 0x478   :  { %v4827_v55 = vpop.permute.xlu0 %4826 }
 0x479   :  { %5059 = vst.msk [vmem:[%s6217_s6 + $0x10] sm:$0xff] %vm4713_vm1, %v4827_v55 }
 0x47c   :  { %v4889_v56 = vpop.permute.xlu0 %4888 }
 0x480   :  { %v4891_v57 = vpop.permute.xlu0 %4890 }
 0x481   :  { %v4893_v1 = vsel %vm4892_vm4, %v4889_v56, %v4891_v57 }
 0x484   :  { %v4778_v58 = vpop.permute.xlu0 %4777 }
 0x485   :  { %4780 = vst.msk [vmem:[%s6217_s6 + $0x8] sm:$0xff] %vm4720_vm2, %v4778_v58 }
 0x488   :  { %v4833_v59 = vpop.permute.xlu0 %4832 }
 0x489   :  { %5060 = vst.msk [vmem:[%s6217_s6 + $0x10] sm:$0xff] %vm4720_vm2, %v4833_v59 }
 0x48b   :  { %v4688_v60 = vpop.xlane.xlu1 %4687 }
 0x48c   :  { %v4689_v61 = vrot.slane %v4688_v60, 4  ;;  %v4843_v62 = vpop.permute.xlu0 %4842 }
 0x48e   :  { %v4690_v63 = vadd.f32 %v4689_v61, %v4688_v60 }
 0x48f   :  { %v4881_v0 = vpop.permute.xlu1 %4880 }
 0x490   :  { %v4691_v2 = vrot.slane %v4690_v63, 2  ;;  %5067 = vst.msk [vmem:[%s6217_s6 + $0x18] sm:$0xff] %vm4713_vm1, %v4881_v0  ;;  %v4899_v3 = vpop.permute.xlu0 %4898 }
 0x491   :  { %5068 = vst.msk [vmem:[%s6217_s6 + $0x18] sm:$0xff] %vm4720_vm2, %v4893_v1 }
 0x492   :  { %v4692_v5 = vadd.f32 %v4691_v2, %v4690_v63  ;;  %5069 = vst.msk [vmem:[%s6217_s6 + $0x18] sm:$0xff] %vm4727_vm3, %v4899_v3 }
 0x493   :  { %v4841_v7 = vpop.permute.xlu1 %4840 }
 0x494   :  { %v4845_v8 = vsel %vm4844_vm5, %v4841_v7, %v4843_v62  ;;  %v4693_v9 = vrot.slane %v4692_v5, 1  ;;  %v4790_v11 = vpop.permute.xlu0 %4789 }
 0x495   :  { %5061 = vst.msk [vmem:[%s6217_s6 + $0x10] sm:$0xff] %vm4727_vm3, %v4845_v8 }
 0x496   :  { %v4694_v12 = vadd.f32 %v4693_v9, %v4692_v5 }
 0x497   :  { %v4784_v13 = vpop.permute.xlu1 %4783 }
 0x498   :  { %4786 = vst.msk [vmem:[%s6217_s6 + $0x8] sm:$0xff] %vm4727_vm3, %v4784_v13  ;;  %v4905_v14 = vpop.permute.xlu0 %4904 }
 0x499   :  { %5264 = vpush %v4694_v12 }
 0x49a   :  { %4792 = vst.msk [vmem:[%s6217_s6 + $0x8] sm:$0xff] %vm4734_vm6, %v4790_v11  ;;  %5070 = vst.msk [vmem:[%s6217_s6 + $0x18] sm:$0xff] %vm4734_vm6, %v4905_v14 }
 0x49b   :  { %v4732_v16 = vpop.permute.xlu1 %4731 }
 0x49c   :  { %4735 = vst.msk [vmem:[%s6217_s6] sm:$0xff] %vm4734_vm6, %v4732_v16  ;;  %v4796_v19 = vpop.permute.xlu0 %4795 }
 0x49d   :  { %4798 = vst.msk [vmem:[%s6217_s6 + $0x8] sm:$0xff] %vm4741_vm7, %v4796_v19 }
 0x49f   :  { %v4851_v20 = vpop.permute.xlu1 %4850 }
 0x4a0   :  { %5062 = vst.msk [vmem:[%s6217_s6 + $0x10] sm:$0xff] %vm4734_vm6, %v4851_v20  ;;  %v4806_v22 = vpop.permute.xlu0 %4805 }
 0x4a3   :  { %v4739_v23 = vpop.permute.xlu1 %4738 }
 0x4a4   :  { %4742 = vst.msk [vmem:[%s6217_s6] sm:$0xff] %vm4741_vm7, %v4739_v23  ;;  %v4911_v24 = vpop.permute.xlu0 %4910 }
 0x4a5   :  { %5071 = vst.msk [vmem:[%s6217_s6 + $0x18] sm:$0xff] %vm4741_vm7, %v4911_v24 }
 0x4a7   :  { %v4804_v25 = vpop.permute.xlu1 %4803 }
 0x4a8   :  { %v4808_v26 = vsel %vm4807_vm8, %v4804_v25, %v4806_v22  ;;  %v4755_v27 = vpop.permute.xlu0 %4754 }
 0x4a9   :  { %4810 = vst.msk [vmem:[%s6217_s6 + $0x8] sm:$0xff] %vm4748_vm9, %v4808_v26 }
 0x4ab   :  { %v4857_v28 = vpop.permute.xlu1 %4856 }
 0x4ac   :  { %5063 = vst.msk [vmem:[%s6217_s6 + $0x10] sm:$0xff] %vm4741_vm7, %v4857_v28  ;;  %v4863_v32 = vpop.permute.xlu0 %4862 }
 0x4ad   :  { %5064 = vst.msk [vmem:[%s6217_s6 + $0x10] sm:$0xff] %vm4748_vm9, %v4863_v32 }
 0x4af   :  { %v4746_v33 = vpop.permute.xlu1 %4745 }
 0x4b0   :  { %4749 = vst.msk [vmem:[%s6217_s6] sm:$0xff] %vm4748_vm9, %v4746_v33  ;;  %v4814_v34 = vpop.permute.xlu0 %4813 }
 0x4b1   :  { %4816 = vst.msk [vmem:[%s6217_s6 + $0x8] sm:$0xff] %vm4761_vm10, %v4814_v34 }
 0x4b3   :  { %v4757_v35 = vpop.permute.xlu1 %4756 }
 0x4b4   :  { %v4759_v36 = vsel %vm4758_vm11, %v4755_v27, %v4757_v35  ;;  %v4923_v37 = vpop.permute.xlu0 %4922 }
 0x4b5   :  { %4762 = vst.msk [vmem:[%s6217_s6] sm:$0xff] %vm4761_vm10, %v4759_v36 }
 0x4b7   :  { %v4917_v18 = vpop.permute.xlu1 %4916 }
 0x4b8   :  { %5072 = vst.msk [vmem:[%s6217_s6 + $0x18] sm:$0xff] %vm4748_vm9, %v4917_v18 }
 0x4b9   :  { %5073 = vst.msk [vmem:[%s6217_s6 + $0x18] sm:$0xff] %vm4761_vm10, %v4923_v37 }
 0x4bb   :  { %v4869_v38 = vpop.permute.xlu1 %4868 }
 0x4bc   :  { %5065 = vst.msk [vmem:[%s6217_s6 + $0x10] sm:$0xff] %vm4761_vm10, %v4869_v38 }
 0x4ca   :  { %s5265_s27 = spop %5264 }
 0x4cb   :  { %s4696_s1 = ssub.f32 0.0, %s5265_s27 }
 0x4cd   :  { %s4697_s28 = smul.f32 0.001953125, %s4696_s1 }
 0x4cf   :  { %4699 = sst [smem:[#allocation4]] %s4697_s28 }
 0x4d0   :  { %5351 = shalt.err (!%p5348_p2)
}
 0x4d1   :  { %s5394_s29 = smov [#allocation4]  }
 0x4d2   :  { %4935 = dma.smem_to_hbm %s5394_s29, 16, %s6218_s7, [#allocation5]  }
 0x4d3   :  { %5352 = dma.done.wait [#allocation5], 16  }
 0x4d4   :  { %5353 = vsyncadd [#allocation5], 4294967280 }
 0x4d5   :  { %4941 = sfence }
 0x4d6   :  { %4942 = vsyncpa [#allocation5], 1 }

</bundles_post_ra>
